<compile_context>
chip_gen: v5e
topology: v5e:2x2
jax: 0.10.0
libtpu: 0.0.40
codegen_flags: <defaults>
</compile_context>

<pallas_src>
import jax
import jax.numpy as jnp
from jax.experimental import pallas as pl
from jax.experimental.pallas import tpu as pltpu

DRUG, DIS = "DrugProfile", "DiseaseProfile"

REL_KEYS = [
    (DRUG, "TREATS", DIS),
    (DIS, "TREATED_BY", DRUG),
    (DRUG, "HAS_CONTRAIND", DIS),
    (DIS, "CONTRAIND_BY", DRUG),
    (DRUG, "HAS_PARENTCODE", DRUG),
    (DRUG, "HAS_CHILDCODE", DRUG),
    (DIS, "HAS_PARENTCODE", DIS),
    (DIS, "HAS_CHILDCODE", DIS),
    (DRUG, "INTERACTS", DRUG),
]

# relation groups keyed by (dst_type, src_type); this fixed order is shared by
# the trace-time weight stacking and the kernel's unrolled loops.
GROUP_KEYS = [(DRUG, DRUG), (DRUG, DIS), (DIS, DRUG), (DIS, DIS)]


def _rels_for(dst, src):
  return [k for k in REL_KEYS if k[2] == dst and k[0] == src]


# ---------------------------------------------------------------------------
# Fused Pallas kernel
# ---------------------------------------------------------------------------


def _fused_forward_kernel(
    # node features (each source matrix passed exactly once)
    x_g_ref, x_d_ref,
    # stacked row-normalized adjacencies, one stack per (dst, src) group
    a_gg_ref, a_gd_ref, a_dg_ref, a_dd_ref,
    # layer-1 neighbor weights (stacked per group) + pre-summed root/bias
    wl1_gg_ref, wl1_gd_ref, wl1_dg_ref, wl1_dd_ref,
    wr1_g_ref, b1_g_ref, wr1_d_ref, b1_d_ref,
    # layer-2 weights (same structure; adjacencies are reused)
    wl2_gg_ref, wl2_gd_ref, wl2_dg_ref, wl2_dd_ref,
    wr2_g_ref, b2_g_ref, wr2_d_ref, b2_d_ref,
    # output heads, lane-padded to a multiple of 128 columns
    hw_g_ref, hb_g_ref, hw_d_ref, hb_d_ref,
    # outputs (lane-dense)
    out_g_ref, out_d_ref):

  x_g = x_g_ref[...]
  x_d = x_d_ref[...]

  def neigh(a_ref, x_src, wl_ref):
    # sum_r (A_r @ X_src) @ Wl_r, fully unrolled (all operands VMEM-resident).
    acc = None
    for r in range(a_ref.shape[0]):
      agg = jnp.dot(a_ref[r], x_src, preferred_element_type=jnp.float32)
      term = jnp.dot(agg, wl_ref[r], preferred_element_type=jnp.float32)
      acc = term if acc is None else acc + term
    return acc

  def hetero_layer(h_g, h_d, wl_gg, wl_gd, wl_dg, wl_dd, wr_g, b_g, wr_d, b_d):
    # HeteroConv(aggr='sum'): neighbor terms per relation group + a single
    # pre-summed root matmul + a single pre-summed bias add per node type.
    o_g = (neigh(a_gg_ref, h_g, wl_gg) + neigh(a_gd_ref, h_d, wl_gd)
           + jnp.dot(h_g, wr_g[...], preferred_element_type=jnp.float32)
           + b_g[...])
    o_d = (neigh(a_dg_ref, h_g, wl_dg) + neigh(a_dd_ref, h_d, wl_dd)
           + jnp.dot(h_d, wr_d[...], preferred_element_type=jnp.float32)
           + b_d[...])
    return o_g, o_d

  # layer 1 + relu.  Dropout is identity: `self.dropout` is undefined in the
  # reference __init__, so eval-mode / identity semantics are used.
  h_g, h_d = hetero_layer(x_g, x_d,
                          wl1_gg_ref, wl1_gd_ref, wl1_dg_ref, wl1_dd_ref,
                          wr1_g_ref, b1_g_ref, wr1_d_ref, b1_d_ref)
  h_g = jnp.maximum(h_g, 0.0)
  h_d = jnp.maximum(h_d, 0.0)

  # layer 2 (no activation before the heads)
  h2_g, h2_d = hetero_layer(h_g, h_d,
                            wl2_gg_ref, wl2_gd_ref, wl2_dg_ref, wl2_dd_ref,
                            wr2_g_ref, b2_g_ref, wr2_d_ref, b2_d_ref)

  # per-type heads: relu(x @ W + b); W/b are zero-padded to 128 lanes so the
  # store is a full-width unmasked vst.
  out_g_ref[...] = jnp.maximum(
      jnp.dot(h2_g, hw_g_ref[...], preferred_element_type=jnp.float32)
      + hb_g_ref[...], 0.0)
  out_d_ref[...] = jnp.maximum(
      jnp.dot(h2_d, hw_d_ref[...], preferred_element_type=jnp.float32)
      + hb_d_ref[...], 0.0)


def fused_forward(x_dict, adj_dict, params1, params2, lin_drug, lin_disease):
  """Run the whole DrugDiseaseHeteroSAGE forward pass in one pallas_call."""
  n_g = x_dict[DRUG].shape[0]
  n_d = x_dict[DIS].shape[0]
  out_ch = lin_drug[0].shape[1]
  o_pad = max(128, ((out_ch + 127) // 128) * 128)   # lane-dense output width

  def adj_stack(dst, src):
    return jnp.stack([adj_dict[k] for k in _rels_for(dst, src)])

  def wl_stack(params, dst, src):
    return jnp.stack([params[k][0] for k in _rels_for(dst, src)])

  def root_sum(params, dst):
    rels = [k for k in REL_KEYS if k[2] == dst]
    wr = sum(params[k][1] for k in rels)
    b = sum(params[k][2] for k in rels).reshape(1, -1)
    return wr, b

  def pad_head(w, b):
    wp = jnp.zeros((w.shape[0], o_pad), jnp.float32).at[:, :out_ch].set(w)
    bp = jnp.zeros((1, o_pad), jnp.float32).at[:, :out_ch].set(
        b.reshape(1, -1))
    return wp, bp

  a_gg, a_gd = adj_stack(DRUG, DRUG), adj_stack(DRUG, DIS)
  a_dg, a_dd = adj_stack(DIS, DRUG), adj_stack(DIS, DIS)

  wl1 = [wl_stack(params1, *g) for g in GROUP_KEYS]
  wl2 = [wl_stack(params2, *g) for g in GROUP_KEYS]
  wr1_g, b1_g = root_sum(params1, DRUG)
  wr1_d, b1_d = root_sum(params1, DIS)
  wr2_g, b2_g = root_sum(params2, DRUG)
  wr2_d, b2_d = root_sum(params2, DIS)
  hw_g, hb_g = pad_head(*lin_drug)
  hw_d, hb_d = pad_head(*lin_disease)

  args = (x_dict[DRUG], x_dict[DIS],
          a_gg, a_gd, a_dg, a_dd,
          wl1[0], wl1[1], wl1[2], wl1[3], wr1_g, b1_g, wr1_d, b1_d,
          wl2[0], wl2[1], wl2[2], wl2[3], wr2_g, b2_g, wr2_d, b2_d,
          hw_g, hb_g, hw_d, hb_d)

  vmem = pl.BlockSpec(memory_space=pltpu.MemorySpace.VMEM)
  out_g, out_d = pl.pallas_call(
      _fused_forward_kernel,
      out_shape=(jax.ShapeDtypeStruct((n_g, o_pad), jnp.float32),
                 jax.ShapeDtypeStruct((n_d, o_pad), jnp.float32)),
      in_specs=[vmem] * len(args),
      out_specs=(vmem, vmem),
  )(*args)

  # slice the real out_channels back out of the lane-padded slabs
  return {DRUG: out_g[:, :out_ch], DIS: out_d[:, :out_ch]}


# ---------------------------------------------------------------------------
# Model setup (glue in plain JAX)
# ---------------------------------------------------------------------------


def make_sage_params(key, f_src, f_dst, hidden):
  k1, k2, k3 = jax.random.split(key, 3)
  # PyG SAGEConv: lin_l (neighbor, with bias) + lin_r (root, no bias).
  # Weights stored pre-transposed as (in_features, hidden).
  wl = (jax.random.normal(k1, (f_src, hidden)) * 0.1).astype(jnp.float32)
  wr = (jax.random.normal(k2, (f_dst, hidden)) * 0.1).astype(jnp.float32)
  b = (jax.random.normal(k3, (hidden,)) * 0.1).astype(jnp.float32)
  return wl, wr, b


def build_adj(edge_index, n_src, n_dst):
  """Dense row-normalized adjacency for mean aggregation (0 for isolated dst)."""
  src, dst = edge_index[0], edge_index[1]
  A = jnp.zeros((n_dst, n_src), jnp.float32).at[dst, src].add(1.0)
  deg = A.sum(axis=1, keepdims=True)
  return jnp.where(deg > 0, A / jnp.maximum(deg, 1.0), 0.0)


# ---------------------------------------------------------------------------
# Pure-JAX reference (for correctness check)
# ---------------------------------------------------------------------------


def ref_hetero_layer(dst_type, x_dict, adj_dict, params):
  out = 0.0
  for k in [r for r in REL_KEYS if r[2] == dst_type]:
    A = adj_dict[k]
    Xs = x_dict[k[0]]
    wl, wr, b = params[k]
    out = out + (A @ Xs) @ wl + x_dict[dst_type] @ wr + b
  return out


def ref_forward(x_dict, adj_dict, params1, params2, lin_drug, lin_disease):
  h = {
      DRUG: jnp.maximum(ref_hetero_layer(DRUG, x_dict, adj_dict, params1), 0.0),
      DIS: jnp.maximum(ref_hetero_layer(DIS, x_dict, adj_dict, params1), 0.0),
  }
  h2 = {
      DRUG: ref_hetero_layer(DRUG, h, adj_dict, params2),
      DIS: ref_hetero_layer(DIS, h, adj_dict, params2),
  }
  return {
      DRUG: jnp.maximum(h2[DRUG] @ lin_drug[0] + lin_drug[1], 0.0),
      DIS: jnp.maximum(h2[DIS] @ lin_disease[0] + lin_disease[1], 0.0),
  }


# ---------------------------------------------------------------------------
# main
# ---------------------------------------------------------------------------

if __name__ == "__main__":
  key = jax.random.PRNGKey(0)

  n_drug, n_dis = 16, 24
  f_drug, f_dis = 12, 10
  hidden, out_channels = 32, 16
  n_feat = {DRUG: f_drug, DIS: f_dis}
  n_nodes = {DRUG: n_drug, DIS: n_dis}

  keys = jax.random.split(key, 64)
  ki = iter(range(64))

  # node features
  x_dict = {
      DRUG: jax.random.normal(keys[next(ki)], (n_drug, f_drug), jnp.float32),
      DIS: jax.random.normal(keys[next(ki)], (n_dis, f_dis), jnp.float32),
  }

  # random edge_index per relation (PyG convention: row0=src, row1=dst)
  adj_dict = {}
  for rel in REL_KEYS:
    src_t, _, dst_t = rel
    n_edges = 40
    src_idx = jax.random.randint(keys[next(ki)], (n_edges,), 0, n_nodes[src_t])
    dst_idx = jax.random.randint(keys[next(ki)], (n_edges,), 0, n_nodes[dst_t])
    edge_index = jnp.stack([src_idx, dst_idx])
    adj_dict[rel] = build_adj(edge_index, n_nodes[src_t], n_nodes[dst_t])

  # SAGEConv parameters for the two HeteroConv layers
  params1 = {}
  params2 = {}
  for rel in REL_KEYS:
    src_t, _, dst_t = rel
    params1[rel] = make_sage_params(keys[next(ki)], n_feat[src_t],
                                    n_feat[dst_t], hidden)
    params2[rel] = make_sage_params(keys[next(ki)], hidden, hidden, hidden)

  # output heads (weights stored pre-transposed: (hidden, out_channels))
  lin_drug = (
      (jax.random.normal(keys[next(ki)], (hidden, out_channels)) * 0.1
       ).astype(jnp.float32),
      (jax.random.normal(keys[next(ki)], (1, out_channels)) * 0.1
       ).astype(jnp.float32),
  )
  lin_disease = (
      (jax.random.normal(keys[next(ki)], (hidden, out_channels)) * 0.1
       ).astype(jnp.float32),
      (jax.random.normal(keys[next(ki)], (1, out_channels)) * 0.1
       ).astype(jnp.float32),
  )

  out = fused_forward(x_dict, adj_dict, params1, params2, lin_drug, lin_disease)
  out = jax.tree_util.tree_map(jax.block_until_ready, out)

  ref = ref_forward(x_dict, adj_dict, params1, params2, lin_drug, lin_disease)
  assert out[DRUG].shape == (n_drug, out_channels)
  assert out[DIS].shape == (n_dis, out_channels)
  assert jnp.allclose(out[DRUG], ref[DRUG], atol=1e-3, rtol=1e-3)
  assert jnp.allclose(out[DIS], ref[DIS], atol=1e-3, rtol=1e-3)

  print("KERNEL_OK")
</pallas_src>

<mosaic_0001>
module attributes {stable_mosaic.version = 11 : i64} {
  func.func @_fused_forward_kernel(%arg0: memref<16x12xf32, #tpu.memory_space<vmem>>, %arg1: memref<24x10xf32, #tpu.memory_space<vmem>>, %arg2: memref<3x16x16xf32, #tpu.memory_space<vmem>>, %arg3: memref<2x16x24xf32, #tpu.memory_space<vmem>>, %arg4: memref<2x24x16xf32, #tpu.memory_space<vmem>>, %arg5: memref<2x24x24xf32, #tpu.memory_space<vmem>>, %arg6: memref<3x12x32xf32, #tpu.memory_space<vmem>>, %arg7: memref<2x10x32xf32, #tpu.memory_space<vmem>>, %arg8: memref<2x12x32xf32, #tpu.memory_space<vmem>>, %arg9: memref<2x10x32xf32, #tpu.memory_space<vmem>>, %arg10: memref<12x32xf32, #tpu.memory_space<vmem>>, %arg11: memref<1x32xf32, #tpu.memory_space<vmem>>, %arg12: memref<10x32xf32, #tpu.memory_space<vmem>>, %arg13: memref<1x32xf32, #tpu.memory_space<vmem>>, %arg14: memref<3x32x32xf32, #tpu.memory_space<vmem>>, %arg15: memref<2x32x32xf32, #tpu.memory_space<vmem>>, %arg16: memref<2x32x32xf32, #tpu.memory_space<vmem>>, %arg17: memref<2x32x32xf32, #tpu.memory_space<vmem>>, %arg18: memref<32x32xf32, #tpu.memory_space<vmem>>, %arg19: memref<1x32xf32, #tpu.memory_space<vmem>>, %arg20: memref<32x32xf32, #tpu.memory_space<vmem>>, %arg21: memref<1x32xf32, #tpu.memory_space<vmem>>, %arg22: memref<32x128xf32, #tpu.memory_space<vmem>>, %arg23: memref<1x128xf32, #tpu.memory_space<vmem>>, %arg24: memref<32x128xf32, #tpu.memory_space<vmem>>, %arg25: memref<1x128xf32, #tpu.memory_space<vmem>>, %arg26: memref<16x128xf32, #tpu.memory_space<vmem>>, %arg27: memref<24x128xf32, #tpu.memory_space<vmem>>) attributes {dimension_semantics = [], scalar_prefetch = 0 : i64, scratch_operands = 0 : i64, tpu.core_type = #tpu.core_type<tc>} {
    %c0 = arith.constant 0 : index
    %c0_0 = arith.constant 0 : index
    %0 = vector.load %arg0[%c0, %c0_0] : memref<16x12xf32, #tpu.memory_space<vmem>>, vector<16x12xf32>
    %c0_1 = arith.constant 0 : index
    %c0_2 = arith.constant 0 : index
    %1 = vector.load %arg1[%c0_1, %c0_2] : memref<24x10xf32, #tpu.memory_space<vmem>>, vector<24x10xf32>
    %c0_3 = arith.constant 0 : index
    %c0_4 = arith.constant 0 : index
    %c0_5 = arith.constant 0 : index
    %2 = vector.load %arg2[%c0_3, %c0_4, %c0_5] : memref<3x16x16xf32, #tpu.memory_space<vmem>>, vector<1x16x16xf32>
    %3 = vector.shape_cast %2 : vector<1x16x16xf32> to vector<16x16xf32>
    %cst = arith.constant dense<0.000000e+00> : vector<16x12xf32>
    %4 = tpu.matmul %3, %0, %cst {dimension_numbers = #tpu.dot_dimension_numbers<[1], [0], [0], [1], [0, 0, 1, 1], [], []>} : vector<16x16xf32>, vector<16x12xf32>, vector<16x12xf32> -> vector<16x12xf32>
    %c0_6 = arith.constant 0 : index
    %c0_7 = arith.constant 0 : index
    %c0_8 = arith.constant 0 : index
    %5 = vector.load %arg6[%c0_6, %c0_7, %c0_8] : memref<3x12x32xf32, #tpu.memory_space<vmem>>, vector<1x12x32xf32>
    %6 = vector.shape_cast %5 : vector<1x12x32xf32> to vector<12x32xf32>
    %cst_9 = arith.constant dense<0.000000e+00> : vector<16x32xf32>
    %7 = tpu.matmul %4, %6, %cst_9 {dimension_numbers = #tpu.dot_dimension_numbers<[1], [0], [0], [1], [0, 0, 1, 1], [], []>} : vector<16x12xf32>, vector<12x32xf32>, vector<16x32xf32> -> vector<16x32xf32>
    %c1 = arith.constant 1 : index
    %c0_10 = arith.constant 0 : index
    %c0_11 = arith.constant 0 : index
    %8 = vector.load %arg2[%c1, %c0_10, %c0_11] : memref<3x16x16xf32, #tpu.memory_space<vmem>>, vector<1x16x16xf32>
    %9 = vector.shape_cast %8 : vector<1x16x16xf32> to vector<16x16xf32>
    %cst_12 = arith.constant dense<0.000000e+00> : vector<16x12xf32>
    %10 = tpu.matmul %9, %0, %cst_12 {dimension_numbers = #tpu.dot_dimension_numbers<[1], [0], [0], [1], [0, 0, 1, 1], [], []>} : vector<16x16xf32>, vector<16x12xf32>, vector<16x12xf32> -> vector<16x12xf32>
    %c1_13 = arith.constant 1 : index
    %c0_14 = arith.constant 0 : index
    %c0_15 = arith.constant 0 : index
    %11 = vector.load %arg6[%c1_13, %c0_14, %c0_15] : memref<3x12x32xf32, #tpu.memory_space<vmem>>, vector<1x12x32xf32>
    %12 = vector.shape_cast %11 : vector<1x12x32xf32> to vector<12x32xf32>
    %cst_16 = arith.constant dense<0.000000e+00> : vector<16x32xf32>
    %13 = tpu.matmul %10, %12, %cst_16 {dimension_numbers = #tpu.dot_dimension_numbers<[1], [0], [0], [1], [0, 0, 1, 1], [], []>} : vector<16x12xf32>, vector<12x32xf32>, vector<16x32xf32> -> vector<16x32xf32>
    %14 = arith.addf %7, %13 : vector<16x32xf32>
    %c2 = arith.constant 2 : index
    %c0_17 = arith.constant 0 : index
    %c0_18 = arith.constant 0 : index
    %15 = vector.load %arg2[%c2, %c0_17, %c0_18] : memref<3x16x16xf32, #tpu.memory_space<vmem>>, vector<1x16x16xf32>
    %16 = vector.shape_cast %15 : vector<1x16x16xf32> to vector<16x16xf32>
    %cst_19 = arith.constant dense<0.000000e+00> : vector<16x12xf32>
    %17 = tpu.matmul %16, %0, %cst_19 {dimension_numbers = #tpu.dot_dimension_numbers<[1], [0], [0], [1], [0, 0, 1, 1], [], []>} : vector<16x16xf32>, vector<16x12xf32>, vector<16x12xf32> -> vector<16x12xf32>
    %c2_20 = arith.constant 2 : index
    %c0_21 = arith.constant 0 : index
    %c0_22 = arith.constant 0 : index
    %18 = vector.load %arg6[%c2_20, %c0_21, %c0_22] : memref<3x12x32xf32, #tpu.memory_space<vmem>>, vector<1x12x32xf32>
    %19 = vector.shape_cast %18 : vector<1x12x32xf32> to vector<12x32xf32>
    %cst_23 = arith.constant dense<0.000000e+00> : vector<16x32xf32>
    %20 = tpu.matmul %17, %19, %cst_23 {dimension_numbers = #tpu.dot_dimension_numbers<[1], [0], [0], [1], [0, 0, 1, 1], [], []>} : vector<16x12xf32>, vector<12x32xf32>, vector<16x32xf32> -> vector<16x32xf32>
    %21 = arith.addf %14, %20 : vector<16x32xf32>
    %c0_24 = arith.constant 0 : index
    %c0_25 = arith.constant 0 : index
    %c0_26 = arith.constant 0 : index
    %22 = vector.load %arg3[%c0_24, %c0_25, %c0_26] : memref<2x16x24xf32, #tpu.memory_space<vmem>>, vector<1x16x24xf32>
    %23 = vector.shape_cast %22 : vector<1x16x24xf32> to vector<16x24xf32>
    %cst_27 = arith.constant dense<0.000000e+00> : vector<16x10xf32>
    %24 = tpu.matmul %23, %1, %cst_27 {dimension_numbers = #tpu.dot_dimension_numbers<[1], [0], [0], [1], [0, 0, 1, 1], [], []>} : vector<16x24xf32>, vector<24x10xf32>, vector<16x10xf32> -> vector<16x10xf32>
    %c0_28 = arith.constant 0 : index
    %c0_29 = arith.constant 0 : index
    %c0_30 = arith.constant 0 : index
    %25 = vector.load %arg7[%c0_28, %c0_29, %c0_30] : memref<2x10x32xf32, #tpu.memory_space<vmem>>, vector<1x10x32xf32>
    %26 = vector.shape_cast %25 : vector<1x10x32xf32> to vector<10x32xf32>
    %cst_31 = arith.constant dense<0.000000e+00> : vector<16x32xf32>
    %27 = tpu.matmul %24, %26, %cst_31 {dimension_numbers = #tpu.dot_dimension_numbers<[1], [0], [0], [1], [0, 0, 1, 1], [], []>} : vector<16x10xf32>, vector<10x32xf32>, vector<16x32xf32> -> vector<16x32xf32>
    %c1_32 = arith.constant 1 : index
    %c0_33 = arith.constant 0 : index
    %c0_34 = arith.constant 0 : index
    %28 = vector.load %arg3[%c1_32, %c0_33, %c0_34] : memref<2x16x24xf32, #tpu.memory_space<vmem>>, vector<1x16x24xf32>
    %29 = vector.shape_cast %28 : vector<1x16x24xf32> to vector<16x24xf32>
    %cst_35 = arith.constant dense<0.000000e+00> : vector<16x10xf32>
    %30 = tpu.matmul %29, %1, %cst_35 {dimension_numbers = #tpu.dot_dimension_numbers<[1], [0], [0], [1], [0, 0, 1, 1], [], []>} : vector<16x24xf32>, vector<24x10xf32>, vector<16x10xf32> -> vector<16x10xf32>
    %c1_36 = arith.constant 1 : index
    %c0_37 = arith.constant 0 : index
    %c0_38 = arith.constant 0 : index
    %31 = vector.load %arg7[%c1_36, %c0_37, %c0_38] : memref<2x10x32xf32, #tpu.memory_space<vmem>>, vector<1x10x32xf32>
    %32 = vector.shape_cast %31 : vector<1x10x32xf32> to vector<10x32xf32>
    %cst_39 = arith.constant dense<0.000000e+00> : vector<16x32xf32>
    %33 = tpu.matmul %30, %32, %cst_39 {dimension_numbers = #tpu.dot_dimension_numbers<[1], [0], [0], [1], [0, 0, 1, 1], [], []>} : vector<16x10xf32>, vector<10x32xf32>, vector<16x32xf32> -> vector<16x32xf32>
    %34 = arith.addf %27, %33 : vector<16x32xf32>
    %35 = arith.addf %21, %34 : vector<16x32xf32>
    %c0_40 = arith.constant 0 : index
    %c0_41 = arith.constant 0 : index
    %36 = vector.load %arg10[%c0_40, %c0_41] : memref<12x32xf32, #tpu.memory_space<vmem>>, vector<12x32xf32>
    %cst_42 = arith.constant dense<0.000000e+00> : vector<16x32xf32>
    %37 = tpu.matmul %0, %36, %cst_42 {dimension_numbers = #tpu.dot_dimension_numbers<[1], [0], [0], [1], [0, 0, 1, 1], [], []>} : vector<16x12xf32>, vector<12x32xf32>, vector<16x32xf32> -> vector<16x32xf32>
    %38 = arith.addf %35, %37 : vector<16x32xf32>
    %c0_43 = arith.constant 0 : index
    %c0_44 = arith.constant 0 : index
    %39 = vector.load %arg11[%c0_43, %c0_44] : memref<1x32xf32, #tpu.memory_space<vmem>>, vector<1x32xf32>
    %40 = vector.broadcast %39 : vector<1x32xf32> to vector<16x32xf32>
    %41 = arith.addf %38, %40 : vector<16x32xf32>
    %c0_45 = arith.constant 0 : index
    %c0_46 = arith.constant 0 : index
    %c0_47 = arith.constant 0 : index
    %42 = vector.load %arg4[%c0_45, %c0_46, %c0_47] : memref<2x24x16xf32, #tpu.memory_space<vmem>>, vector<1x24x16xf32>
    %43 = vector.shape_cast %42 : vector<1x24x16xf32> to vector<24x16xf32>
    %cst_48 = arith.constant dense<0.000000e+00> : vector<24x12xf32>
    %44 = tpu.matmul %43, %0, %cst_48 {dimension_numbers = #tpu.dot_dimension_numbers<[1], [0], [0], [1], [0, 0, 1, 1], [], []>} : vector<24x16xf32>, vector<16x12xf32>, vector<24x12xf32> -> vector<24x12xf32>
    %c0_49 = arith.constant 0 : index
    %c0_50 = arith.constant 0 : index
    %c0_51 = arith.constant 0 : index
    %45 = vector.load %arg8[%c0_49, %c0_50, %c0_51] : memref<2x12x32xf32, #tpu.memory_space<vmem>>, vector<1x12x32xf32>
    %46 = vector.shape_cast %45 : vector<1x12x32xf32> to vector<12x32xf32>
    %cst_52 = arith.constant dense<0.000000e+00> : vector<24x32xf32>
    %47 = tpu.matmul %44, %46, %cst_52 {dimension_numbers = #tpu.dot_dimension_numbers<[1], [0], [0], [1], [0, 0, 1, 1], [], []>} : vector<24x12xf32>, vector<12x32xf32>, vector<24x32xf32> -> vector<24x32xf32>
    %c1_53 = arith.constant 1 : index
    %c0_54 = arith.constant 0 : index
    %c0_55 = arith.constant 0 : index
    %48 = vector.load %arg4[%c1_53, %c0_54, %c0_55] : memref<2x24x16xf32, #tpu.memory_space<vmem>>, vector<1x24x16xf32>
    %49 = vector.shape_cast %48 : vector<1x24x16xf32> to vector<24x16xf32>
    %cst_56 = arith.constant dense<0.000000e+00> : vector<24x12xf32>
    %50 = tpu.matmul %49, %0, %cst_56 {dimension_numbers = #tpu.dot_dimension_numbers<[1], [0], [0], [1], [0, 0, 1, 1], [], []>} : vector<24x16xf32>, vector<16x12xf32>, vector<24x12xf32> -> vector<24x12xf32>
    %c1_57 = arith.constant 1 : index
    %c0_58 = arith.constant 0 : index
    %c0_59 = arith.constant 0 : index
    %51 = vector.load %arg8[%c1_57, %c0_58, %c0_59] : memref<2x12x32xf32, #tpu.memory_space<vmem>>, vector<1x12x32xf32>
    %52 = vector.shape_cast %51 : vector<1x12x32xf32> to vector<12x32xf32>
    %cst_60 = arith.constant dense<0.000000e+00> : vector<24x32xf32>
    %53 = tpu.matmul %50, %52, %cst_60 {dimension_numbers = #tpu.dot_dimension_numbers<[1], [0], [0], [1], [0, 0, 1, 1], [], []>} : vector<24x12xf32>, vector<12x32xf32>, vector<24x32xf32> -> vector<24x32xf32>
    %54 = arith.addf %47, %53 : vector<24x32xf32>
    %c0_61 = arith.constant 0 : index
    %c0_62 = arith.constant 0 : index
    %c0_63 = arith.constant 0 : index
    %55 = vector.load %arg5[%c0_61, %c0_62, %c0_63] : memref<2x24x24xf32, #tpu.memory_space<vmem>>, vector<1x24x24xf32>
    %56 = vector.shape_cast %55 : vector<1x24x24xf32> to vector<24x24xf32>
    %cst_64 = arith.constant dense<0.000000e+00> : vector<24x10xf32>
    %57 = tpu.matmul %56, %1, %cst_64 {dimension_numbers = #tpu.dot_dimension_numbers<[1], [0], [0], [1], [0, 0, 1, 1], [], []>} : vector<24x24xf32>, vector<24x10xf32>, vector<24x10xf32> -> vector<24x10xf32>
    %c0_65 = arith.constant 0 : index
    %c0_66 = arith.constant 0 : index
    %c0_67 = arith.constant 0 : index
    %58 = vector.load %arg9[%c0_65, %c0_66, %c0_67] : memref<2x10x32xf32, #tpu.memory_space<vmem>>, vector<1x10x32xf32>
    %59 = vector.shape_cast %58 : vector<1x10x32xf32> to vector<10x32xf32>
    %cst_68 = arith.constant dense<0.000000e+00> : vector<24x32xf32>
    %60 = tpu.matmul %57, %59, %cst_68 {dimension_numbers = #tpu.dot_dimension_numbers<[1], [0], [0], [1], [0, 0, 1, 1], [], []>} : vector<24x10xf32>, vector<10x32xf32>, vector<24x32xf32> -> vector<24x32xf32>
    %c1_69 = arith.constant 1 : index
    %c0_70 = arith.constant 0 : index
    %c0_71 = arith.constant 0 : index
    %61 = vector.load %arg5[%c1_69, %c0_70, %c0_71] : memref<2x24x24xf32, #tpu.memory_space<vmem>>, vector<1x24x24xf32>
    %62 = vector.shape_cast %61 : vector<1x24x24xf32> to vector<24x24xf32>
    %cst_72 = arith.constant dense<0.000000e+00> : vector<24x10xf32>
    %63 = tpu.matmul %62, %1, %cst_72 {dimension_numbers = #tpu.dot_dimension_numbers<[1], [0], [0], [1], [0, 0, 1, 1], [], []>} : vector<24x24xf32>, vector<24x10xf32>, vector<24x10xf32> -> vector<24x10xf32>
    %c1_73 = arith.constant 1 : index
    %c0_74 = arith.constant 0 : index
    %c0_75 = arith.constant 0 : index
    %64 = vector.load %arg9[%c1_73, %c0_74, %c0_75] : memref<2x10x32xf32, #tpu.memory_space<vmem>>, vector<1x10x32xf32>
    %65 = vector.shape_cast %64 : vector<1x10x32xf32> to vector<10x32xf32>
    %cst_76 = arith.constant dense<0.000000e+00> : vector<24x32xf32>
    %66 = tpu.matmul %63, %65, %cst_76 {dimension_numbers = #tpu.dot_dimension_numbers<[1], [0], [0], [1], [0, 0, 1, 1], [], []>} : vector<24x10xf32>, vector<10x32xf32>, vector<24x32xf32> -> vector<24x32xf32>
    %67 = arith.addf %60, %66 : vector<24x32xf32>
    %68 = arith.addf %54, %67 : vector<24x32xf32>
    %c0_77 = arith.constant 0 : index
    %c0_78 = arith.constant 0 : index
    %69 = vector.load %arg12[%c0_77, %c0_78] : memref<10x32xf32, #tpu.memory_space<vmem>>, vector<10x32xf32>
    %cst_79 = arith.constant dense<0.000000e+00> : vector<24x32xf32>
    %70 = tpu.matmul %1, %69, %cst_79 {dimension_numbers = #tpu.dot_dimension_numbers<[1], [0], [0], [1], [0, 0, 1, 1], [], []>} : vector<24x10xf32>, vector<10x32xf32>, vector<24x32xf32> -> vector<24x32xf32>
    %71 = arith.addf %68, %70 : vector<24x32xf32>
    %c0_80 = arith.constant 0 : index
    %c0_81 = arith.constant 0 : index
    %72 = vector.load %arg13[%c0_80, %c0_81] : memref<1x32xf32, #tpu.memory_space<vmem>>, vector<1x32xf32>
    %73 = vector.broadcast %72 : vector<1x32xf32> to vector<24x32xf32>
    %74 = arith.addf %71, %73 : vector<24x32xf32>
    %cst_82 = arith.constant 0.000000e+00 : f32
    %75 = vector.broadcast %cst_82 : f32 to vector<16x32xf32>
    %76 = arith.maximumf %41, %75 : vector<16x32xf32>
    %cst_83 = arith.constant 0.000000e+00 : f32
    %77 = vector.broadcast %cst_83 : f32 to vector<24x32xf32>
    %78 = arith.maximumf %74, %77 : vector<24x32xf32>
    %c0_84 = arith.constant 0 : index
    %c0_85 = arith.constant 0 : index
    %c0_86 = arith.constant 0 : index
    %79 = vector.load %arg2[%c0_84, %c0_85, %c0_86] : memref<3x16x16xf32, #tpu.memory_space<vmem>>, vector<1x16x16xf32>
    %80 = vector.shape_cast %79 : vector<1x16x16xf32> to vector<16x16xf32>
    %cst_87 = arith.constant dense<0.000000e+00> : vector<16x32xf32>
    %81 = tpu.matmul %80, %76, %cst_87 {dimension_numbers = #tpu.dot_dimension_numbers<[1], [0], [0], [1], [0, 0, 1, 1], [], []>} : vector<16x16xf32>, vector<16x32xf32>, vector<16x32xf32> -> vector<16x32xf32>
    %c0_88 = arith.constant 0 : index
    %c0_89 = arith.constant 0 : index
    %c0_90 = arith.constant 0 : index
    %82 = vector.load %arg14[%c0_88, %c0_89, %c0_90] : memref<3x32x32xf32, #tpu.memory_space<vmem>>, vector<1x32x32xf32>
    %83 = vector.shape_cast %82 : vector<1x32x32xf32> to vector<32x32xf32>
    %cst_91 = arith.constant dense<0.000000e+00> : vector<16x32xf32>
    %84 = tpu.matmul %81, %83, %cst_91 {dimension_numbers = #tpu.dot_dimension_numbers<[1], [0], [0], [1], [0, 0, 1, 1], [], []>} : vector<16x32xf32>, vector<32x32xf32>, vector<16x32xf32> -> vector<16x32xf32>
    %c1_92 = arith.constant 1 : index
    %c0_93 = arith.constant 0 : index
    %c0_94 = arith.constant 0 : index
    %85 = vector.load %arg2[%c1_92, %c0_93, %c0_94] : memref<3x16x16xf32, #tpu.memory_space<vmem>>, vector<1x16x16xf32>
    %86 = vector.shape_cast %85 : vector<1x16x16xf32> to vector<16x16xf32>
    %cst_95 = arith.constant dense<0.000000e+00> : vector<16x32xf32>
    %87 = tpu.matmul %86, %76, %cst_95 {dimension_numbers = #tpu.dot_dimension_numbers<[1], [0], [0], [1], [0, 0, 1, 1], [], []>} : vector<16x16xf32>, vector<16x32xf32>, vector<16x32xf32> -> vector<16x32xf32>
    %c1_96 = arith.constant 1 : index
    %c0_97 = arith.constant 0 : index
    %c0_98 = arith.constant 0 : index
    %88 = vector.load %arg14[%c1_96, %c0_97, %c0_98] : memref<3x32x32xf32, #tpu.memory_space<vmem>>, vector<1x32x32xf32>
    %89 = vector.shape_cast %88 : vector<1x32x32xf32> to vector<32x32xf32>
    %cst_99 = arith.constant dense<0.000000e+00> : vector<16x32xf32>
    %90 = tpu.matmul %87, %89, %cst_99 {dimension_numbers = #tpu.dot_dimension_numbers<[1], [0], [0], [1], [0, 0, 1, 1], [], []>} : vector<16x32xf32>, vector<32x32xf32>, vector<16x32xf32> -> vector<16x32xf32>
    %91 = arith.addf %84, %90 : vector<16x32xf32>
    %c2_100 = arith.constant 2 : index
    %c0_101 = arith.constant 0 : index
    %c0_102 = arith.constant 0 : index
    %92 = vector.load %arg2[%c2_100, %c0_101, %c0_102] : memref<3x16x16xf32, #tpu.memory_space<vmem>>, vector<1x16x16xf32>
    %93 = vector.shape_cast %92 : vector<1x16x16xf32> to vector<16x16xf32>
    %cst_103 = arith.constant dense<0.000000e+00> : vector<16x32xf32>
    %94 = tpu.matmul %93, %76, %cst_103 {dimension_numbers = #tpu.dot_dimension_numbers<[1], [0], [0], [1], [0, 0, 1, 1], [], []>} : vector<16x16xf32>, vector<16x32xf32>, vector<16x32xf32> -> vector<16x32xf32>
    %c2_104 = arith.constant 2 : index
    %c0_105 = arith.constant 0 : index
    %c0_106 = arith.constant 0 : index
    %95 = vector.load %arg14[%c2_104, %c0_105, %c0_106] : memref<3x32x32xf32, #tpu.memory_space<vmem>>, vector<1x32x32xf32>
    %96 = vector.shape_cast %95 : vector<1x32x32xf32> to vector<32x32xf32>
    %cst_107 = arith.constant dense<0.000000e+00> : vector<16x32xf32>
    %97 = tpu.matmul %94, %96, %cst_107 {dimension_numbers = #tpu.dot_dimension_numbers<[1], [0], [0], [1], [0, 0, 1, 1], [], []>} : vector<16x32xf32>, vector<32x32xf32>, vector<16x32xf32> -> vector<16x32xf32>
    %98 = arith.addf %91, %97 : vector<16x32xf32>
    %c0_108 = arith.constant 0 : index
    %c0_109 = arith.constant 0 : index
    %c0_110 = arith.constant 0 : index
    %99 = vector.load %arg3[%c0_108, %c0_109, %c0_110] : memref<2x16x24xf32, #tpu.memory_space<vmem>>, vector<1x16x24xf32>
    %100 = vector.shape_cast %99 : vector<1x16x24xf32> to vector<16x24xf32>
    %cst_111 = arith.constant dense<0.000000e+00> : vector<16x32xf32>
    %101 = tpu.matmul %100, %78, %cst_111 {dimension_numbers = #tpu.dot_dimension_numbers<[1], [0], [0], [1], [0, 0, 1, 1], [], []>} : vector<16x24xf32>, vector<24x32xf32>, vector<16x32xf32> -> vector<16x32xf32>
    %c0_112 = arith.constant 0 : index
    %c0_113 = arith.constant 0 : index
    %c0_114 = arith.constant 0 : index
    %102 = vector.load %arg15[%c0_112, %c0_113, %c0_114] : memref<2x32x32xf32, #tpu.memory_space<vmem>>, vector<1x32x32xf32>
    %103 = vector.shape_cast %102 : vector<1x32x32xf32> to vector<32x32xf32>
    %cst_115 = arith.constant dense<0.000000e+00> : vector<16x32xf32>
    %104 = tpu.matmul %101, %103, %cst_115 {dimension_numbers = #tpu.dot_dimension_numbers<[1], [0], [0], [1], [0, 0, 1, 1], [], []>} : vector<16x32xf32>, vector<32x32xf32>, vector<16x32xf32> -> vector<16x32xf32>
    %c1_116 = arith.constant 1 : index
    %c0_117 = arith.constant 0 : index
    %c0_118 = arith.constant 0 : index
    %105 = vector.load %arg3[%c1_116, %c0_117, %c0_118] : memref<2x16x24xf32, #tpu.memory_space<vmem>>, vector<1x16x24xf32>
    %106 = vector.shape_cast %105 : vector<1x16x24xf32> to vector<16x24xf32>
    %cst_119 = arith.constant dense<0.000000e+00> : vector<16x32xf32>
    %107 = tpu.matmul %106, %78, %cst_119 {dimension_numbers = #tpu.dot_dimension_numbers<[1], [0], [0], [1], [0, 0, 1, 1], [], []>} : vector<16x24xf32>, vector<24x32xf32>, vector<16x32xf32> -> vector<16x32xf32>
    %c1_120 = arith.constant 1 : index
    %c0_121 = arith.constant 0 : index
    %c0_122 = arith.constant 0 : index
    %108 = vector.load %arg15[%c1_120, %c0_121, %c0_122] : memref<2x32x32xf32, #tpu.memory_space<vmem>>, vector<1x32x32xf32>
    %109 = vector.shape_cast %108 : vector<1x32x32xf32> to vector<32x32xf32>
    %cst_123 = arith.constant dense<0.000000e+00> : vector<16x32xf32>
    %110 = tpu.matmul %107, %109, %cst_123 {dimension_numbers = #tpu.dot_dimension_numbers<[1], [0], [0], [1], [0, 0, 1, 1], [], []>} : vector<16x32xf32>, vector<32x32xf32>, vector<16x32xf32> -> vector<16x32xf32>
    %111 = arith.addf %104, %110 : vector<16x32xf32>
    %112 = arith.addf %98, %111 : vector<16x32xf32>
    %c0_124 = arith.constant 0 : index
    %c0_125 = arith.constant 0 : index
    %113 = vector.load %arg18[%c0_124, %c0_125] : memref<32x32xf32, #tpu.memory_space<vmem>>, vector<32x32xf32>
    %cst_126 = arith.constant dense<0.000000e+00> : vector<16x32xf32>
    %114 = tpu.matmul %76, %113, %cst_126 {dimension_numbers = #tpu.dot_dimension_numbers<[1], [0], [0], [1], [0, 0, 1, 1], [], []>} : vector<16x32xf32>, vector<32x32xf32>, vector<16x32xf32> -> vector<16x32xf32>
    %115 = arith.addf %112, %114 : vector<16x32xf32>
    %c0_127 = arith.constant 0 : index
    %c0_128 = arith.constant 0 : index
    %116 = vector.load %arg19[%c0_127, %c0_128] : memref<1x32xf32, #tpu.memory_space<vmem>>, vector<1x32xf32>
    %117 = vector.broadcast %116 : vector<1x32xf32> to vector<16x32xf32>
    %118 = arith.addf %115, %117 : vector<16x32xf32>
    %c0_129 = arith.constant 0 : index
    %c0_130 = arith.constant 0 : index
    %c0_131 = arith.constant 0 : index
    %119 = vector.load %arg4[%c0_129, %c0_130, %c0_131] : memref<2x24x16xf32, #tpu.memory_space<vmem>>, vector<1x24x16xf32>
    %120 = vector.shape_cast %119 : vector<1x24x16xf32> to vector<24x16xf32>
    %cst_132 = arith.constant dense<0.000000e+00> : vector<24x32xf32>
    %121 = tpu.matmul %120, %76, %cst_132 {dimension_numbers = #tpu.dot_dimension_numbers<[1], [0], [0], [1], [0, 0, 1, 1], [], []>} : vector<24x16xf32>, vector<16x32xf32>, vector<24x32xf32> -> vector<24x32xf32>
    %c0_133 = arith.constant 0 : index
    %c0_134 = arith.constant 0 : index
    %c0_135 = arith.constant 0 : index
    %122 = vector.load %arg16[%c0_133, %c0_134, %c0_135] : memref<2x32x32xf32, #tpu.memory_space<vmem>>, vector<1x32x32xf32>
    %123 = vector.shape_cast %122 : vector<1x32x32xf32> to vector<32x32xf32>
    %cst_136 = arith.constant dense<0.000000e+00> : vector<24x32xf32>
    %124 = tpu.matmul %121, %123, %cst_136 {dimension_numbers = #tpu.dot_dimension_numbers<[1], [0], [0], [1], [0, 0, 1, 1], [], []>} : vector<24x32xf32>, vector<32x32xf32>, vector<24x32xf32> -> vector<24x32xf32>
    %c1_137 = arith.constant 1 : index
    %c0_138 = arith.constant 0 : index
    %c0_139 = arith.constant 0 : index
    %125 = vector.load %arg4[%c1_137, %c0_138, %c0_139] : memref<2x24x16xf32, #tpu.memory_space<vmem>>, vector<1x24x16xf32>
    %126 = vector.shape_cast %125 : vector<1x24x16xf32> to vector<24x16xf32>
    %cst_140 = arith.constant dense<0.000000e+00> : vector<24x32xf32>
    %127 = tpu.matmul %126, %76, %cst_140 {dimension_numbers = #tpu.dot_dimension_numbers<[1], [0], [0], [1], [0, 0, 1, 1], [], []>} : vector<24x16xf32>, vector<16x32xf32>, vector<24x32xf32> -> vector<24x32xf32>
    %c1_141 = arith.constant 1 : index
    %c0_142 = arith.constant 0 : index
    %c0_143 = arith.constant 0 : index
    %128 = vector.load %arg16[%c1_141, %c0_142, %c0_143] : memref<2x32x32xf32, #tpu.memory_space<vmem>>, vector<1x32x32xf32>
    %129 = vector.shape_cast %128 : vector<1x32x32xf32> to vector<32x32xf32>
    %cst_144 = arith.constant dense<0.000000e+00> : vector<24x32xf32>
    %130 = tpu.matmul %127, %129, %cst_144 {dimension_numbers = #tpu.dot_dimension_numbers<[1], [0], [0], [1], [0, 0, 1, 1], [], []>} : vector<24x32xf32>, vector<32x32xf32>, vector<24x32xf32> -> vector<24x32xf32>
    %131 = arith.addf %124, %130 : vector<24x32xf32>
    %c0_145 = arith.constant 0 : index
    %c0_146 = arith.constant 0 : index
    %c0_147 = arith.constant 0 : index
    %132 = vector.load %arg5[%c0_145, %c0_146, %c0_147] : memref<2x24x24xf32, #tpu.memory_space<vmem>>, vector<1x24x24xf32>
    %133 = vector.shape_cast %132 : vector<1x24x24xf32> to vector<24x24xf32>
    %cst_148 = arith.constant dense<0.000000e+00> : vector<24x32xf32>
    %134 = tpu.matmul %133, %78, %cst_148 {dimension_numbers = #tpu.dot_dimension_numbers<[1], [0], [0], [1], [0, 0, 1, 1], [], []>} : vector<24x24xf32>, vector<24x32xf32>, vector<24x32xf32> -> vector<24x32xf32>
    %c0_149 = arith.constant 0 : index
    %c0_150 = arith.constant 0 : index
    %c0_151 = arith.constant 0 : index
    %135 = vector.load %arg17[%c0_149, %c0_150, %c0_151] : memref<2x32x32xf32, #tpu.memory_space<vmem>>, vector<1x32x32xf32>
    %136 = vector.shape_cast %135 : vector<1x32x32xf32> to vector<32x32xf32>
    %cst_152 = arith.constant dense<0.000000e+00> : vector<24x32xf32>
    %137 = tpu.matmul %134, %136, %cst_152 {dimension_numbers = #tpu.dot_dimension_numbers<[1], [0], [0], [1], [0, 0, 1, 1], [], []>} : vector<24x32xf32>, vector<32x32xf32>, vector<24x32xf32> -> vector<24x32xf32>
    %c1_153 = arith.constant 1 : index
    %c0_154 = arith.constant 0 : index
    %c0_155 = arith.constant 0 : index
    %138 = vector.load %arg5[%c1_153, %c0_154, %c0_155] : memref<2x24x24xf32, #tpu.memory_space<vmem>>, vector<1x24x24xf32>
    %139 = vector.shape_cast %138 : vector<1x24x24xf32> to vector<24x24xf32>
    %cst_156 = arith.constant dense<0.000000e+00> : vector<24x32xf32>
    %140 = tpu.matmul %139, %78, %cst_156 {dimension_numbers = #tpu.dot_dimension_numbers<[1], [0], [0], [1], [0, 0, 1, 1], [], []>} : vector<24x24xf32>, vector<24x32xf32>, vector<24x32xf32> -> vector<24x32xf32>
    %c1_157 = arith.constant 1 : index
    %c0_158 = arith.constant 0 : index
    %c0_159 = arith.constant 0 : index
    %141 = vector.load %arg17[%c1_157, %c0_158, %c0_159] : memref<2x32x32xf32, #tpu.memory_space<vmem>>, vector<1x32x32xf32>
    %142 = vector.shape_cast %141 : vector<1x32x32xf32> to vector<32x32xf32>
    %cst_160 = arith.constant dense<0.000000e+00> : vector<24x32xf32>
    %143 = tpu.matmul %140, %142, %cst_160 {dimension_numbers = #tpu.dot_dimension_numbers<[1], [0], [0], [1], [0, 0, 1, 1], [], []>} : vector<24x32xf32>, vector<32x32xf32>, vector<24x32xf32> -> vector<24x32xf32>
    %144 = arith.addf %137, %143 : vector<24x32xf32>
    %145 = arith.addf %131, %144 : vector<24x32xf32>
    %c0_161 = arith.constant 0 : index
    %c0_162 = arith.constant 0 : index
    %146 = vector.load %arg20[%c0_161, %c0_162] : memref<32x32xf32, #tpu.memory_space<vmem>>, vector<32x32xf32>
    %cst_163 = arith.constant dense<0.000000e+00> : vector<24x32xf32>
    %147 = tpu.matmul %78, %146, %cst_163 {dimension_numbers = #tpu.dot_dimension_numbers<[1], [0], [0], [1], [0, 0, 1, 1], [], []>} : vector<24x32xf32>, vector<32x32xf32>, vector<24x32xf32> -> vector<24x32xf32>
    %148 = arith.addf %145, %147 : vector<24x32xf32>
    %c0_164 = arith.constant 0 : index
    %c0_165 = arith.constant 0 : index
    %149 = vector.load %arg21[%c0_164, %c0_165] : memref<1x32xf32, #tpu.memory_space<vmem>>, vector<1x32xf32>
    %150 = vector.broadcast %149 : vector<1x32xf32> to vector<24x32xf32>
    %151 = arith.addf %148, %150 : vector<24x32xf32>
    %c0_166 = arith.constant 0 : index
    %c0_167 = arith.constant 0 : index
    %152 = vector.load %arg22[%c0_166, %c0_167] : memref<32x128xf32, #tpu.memory_space<vmem>>, vector<32x128xf32>
    %cst_168 = arith.constant dense<0.000000e+00> : vector<16x128xf32>
    %153 = tpu.matmul %118, %152, %cst_168 {dimension_numbers = #tpu.dot_dimension_numbers<[1], [0], [0], [1], [0, 0, 1, 1], [], []>} : vector<16x32xf32>, vector<32x128xf32>, vector<16x128xf32> -> vector<16x128xf32>
    %c0_169 = arith.constant 0 : index
    %c0_170 = arith.constant 0 : index
    %154 = vector.load %arg23[%c0_169, %c0_170] : memref<1x128xf32, #tpu.memory_space<vmem>>, vector<1x128xf32>
    %155 = vector.broadcast %154 : vector<1x128xf32> to vector<16x128xf32>
    %156 = arith.addf %153, %155 : vector<16x128xf32>
    %cst_171 = arith.constant 0.000000e+00 : f32
    %157 = vector.broadcast %cst_171 : f32 to vector<16x128xf32>
    %158 = arith.maximumf %156, %157 : vector<16x128xf32>
    %c0_172 = arith.constant 0 : index
    %c0_173 = arith.constant 0 : index
    %159 = vector.load %arg26[%c0_172, %c0_173] : memref<16x128xf32, #tpu.memory_space<vmem>>, vector<16x128xf32>
    tpu.vector_store %arg26[%c0_172, %c0_173], %158 {strides = array<i32>} : memref<16x128xf32, #tpu.memory_space<vmem>>, vector<16x128xf32>,
    %c0_174 = arith.constant 0 : index
    %c0_175 = arith.constant 0 : index
    %160 = vector.load %arg24[%c0_174, %c0_175] : memref<32x128xf32, #tpu.memory_space<vmem>>, vector<32x128xf32>
    %cst_176 = arith.constant dense<0.000000e+00> : vector<24x128xf32>
    %161 = tpu.matmul %151, %160, %cst_176 {dimension_numbers = #tpu.dot_dimension_numbers<[1], [0], [0], [1], [0, 0, 1, 1], [], []>} : vector<24x32xf32>, vector<32x128xf32>, vector<24x128xf32> -> vector<24x128xf32>
    %c0_177 = arith.constant 0 : index
    %c0_178 = arith.constant 0 : index
    %162 = vector.load %arg25[%c0_177, %c0_178] : memref<1x128xf32, #tpu.memory_space<vmem>>, vector<1x128xf32>
    %163 = vector.broadcast %162 : vector<1x128xf32> to vector<24x128xf32>
    %164 = arith.addf %161, %163 : vector<24x128xf32>
    %cst_179 = arith.constant 0.000000e+00 : f32
    %165 = vector.broadcast %cst_179 : f32 to vector<24x128xf32>
    %166 = arith.maximumf %164, %165 : vector<24x128xf32>
    %c0_180 = arith.constant 0 : index
    %c0_181 = arith.constant 0 : index
    %167 = vector.load %arg27[%c0_180, %c0_181] : memref<24x128xf32, #tpu.memory_space<vmem>>, vector<24x128xf32>
    tpu.vector_store %arg27[%c0_180, %c0_181], %166 {strides = array<i32>} : memref<24x128xf32, #tpu.memory_space<vmem>>, vector<24x128xf32>,
    return
  }
}

</mosaic_0001>

<bundles_post_ra>
// kernel: tpu_custom_call.1
= control target key start
LH: loop header
LB: loop body
LE: loop exit
PB: predicated region body
PF: predicated region fallthrough
CT: control target
= control target key end

     0   :  { %s2996_s0 = inlined_call_operand.hbm [shape: f32[16,12], index: 0, kind: input, shape index: {}]   ;;  %s2997_s1 = inlined_call_operand.vmem [shape: f32[24,10], index: 1, kind: input, shape index: {}]   ;;  %s2998_s2 = inlined_call_operand.hbm [shape: f32[3,16,16], index: 2, kind: input, shape index: {}]   ;;  %s2999_s3 = inlined_call_operand.hbm [shape: f32[2,16,24], index: 3, kind: input, shape index: {}]   ;;  %s3000_s4 = inlined_call_operand.vmem [shape: f32[2,24,16], index: 4, kind: input, shape index: {}]   ;;  %s3001_s5 = inlined_call_operand.hbm [shape: f32[2,24,24], index: 5, kind: input, shape index: {}]   ;;  %s3002_s6 = inlined_call_operand.hbm [shape: f32[3,12,32], index: 6, kind: input, shape index: {}]   ;;  %s3003_s7 = inlined_call_operand.vmem [shape: f32[2,10,32], index: 7, kind: input, shape index: {}]   ;;  %s3004_s8 = inlined_call_operand.vmem [shape: f32[2,12,32], index: 8, kind: input, shape index: {}]   ;;  %s3005_s9 = inlined_call_operand.vmem [shape: f32[2,10,32], index: 9, kind: input, shape index: {}]   ;;  %s3006_s10 = inlined_call_operand.hbm [shape: f32[12,32], index: 10, kind: input, shape index: {}]   ;;  %s3007_s11 = inlined_call_operand.vmem [shape: f32[1,32], index: 11, kind: input, shape index: {}]   ;;  %s3008_s12 = inlined_call_operand.hbm [shape: f32[10,32], index: 12, kind: input, shape index: {}]   ;;  %s3009_s13 = inlined_call_operand.vmem [shape: f32[1,32], index: 13, kind: input, shape index: {}]   ;;  %s3010_s14 = inlined_call_operand.vmem [shape: f32[3,32,32], index: 14, kind: input, shape index: {}]   ;;  %s3011_s15 = inlined_call_operand.vmem [shape: f32[2,32,32], index: 15, kind: input, shape index: {}]   ;;  %s3012_s16 = inlined_call_operand.hbm [shape: f32[2,32,32], index: 16, kind: input, shape index: {}]   ;;  %s3013_s17 = inlined_call_operand.hbm [shape: f32[2,32,32], index: 17, kind: input, shape index: {}]   ;;  %s3014_s18 = inlined_call_operand.vmem [shape: f32[32,32], index: 18, kind: input, shape index: {}]   ;;  %s3015_s19 = inlined_call_operand.vmem [shape: f32[1,32], index: 19, kind: input, shape index: {}]   ;;  %s3016_s20 = inlined_call_operand.hbm [shape: f32[32,32], index: 20, kind: input, shape index: {}]   ;;  %s3017_s21 = inlined_call_operand.vmem [shape: f32[1,32], index: 21, kind: input, shape index: {}]   ;;  %s3018_s22 = inlined_call_operand.hbm [shape: f32[32,128], index: 22, kind: input, shape index: {}]   ;;  %s3019_s23 = inlined_call_operand.vmem [shape: f32[1,128], index: 23, kind: input, shape index: {}]   ;;  %s3020_s24 = inlined_call_operand.hbm [shape: f32[32,128], index: 24, kind: input, shape index: {}]   ;;  %s3021_s25 = inlined_call_operand.vmem [shape: f32[1,128], index: 25, kind: input, shape index: {}]   ;;  %s3022_s26 = inlined_call_operand.hbm [shape: f32[16,128], index: 26, kind: output, shape index: {0}]   ;;  %s3023_s27 = inlined_call_operand.hbm [shape: f32[24,128], index: 27, kind: output, shape index: {1}]  }
   0x1   :  { %3029 = sst [smem:[#allocation34_spill]] %s2996_s0 }
   0x2   :  { %3030 = sst [smem:[#allocation35_spill]] %s2997_s1 }
   0x3   :  { %3031 = sst [smem:[#allocation36_spill]] %s2998_s2 }
   0x4   :  { %3032 = sst [smem:[#allocation37_spill]] %s2999_s3 }
   0x5   :  { %3033 = sst [smem:[#allocation38_spill]] %s3000_s4 }
   0x6   :  { %3034 = sst [smem:[#allocation39_spill]] %s3001_s5 }
   0x7   :  { %3035 = sst [smem:[#allocation40_spill]] %s3002_s6 }
   0x8   :  { %3036 = sst [smem:[#allocation41_spill]] %s3003_s7 }
   0x9   :  { %3037 = sst [smem:[#allocation42_spill]] %s3004_s8 }
   0xa   :  { %3038 = sst [smem:[#allocation43_spill]] %s3005_s9 }
   0xb   :  { %3039 = sst [smem:[#allocation44_spill]] %s3006_s10 }
   0xc   :  { %3040 = sst [smem:[#allocation45_spill]] %s3007_s11 }
   0xd   :  { %3041 = sst [smem:[#allocation46_spill]] %s3023_s27 }
   0xe   :  { %33 = vsyncpa [#allocation3], 0 }
   0xf   :  { %34 = vsyncpa [#allocation6], 0 }
  0x10   :  { %35 = vsyncpa [#allocation9], 0 }
  0x11   :  { %36 = vsyncpa [#allocation12], 0 }
  0x12   :  { %37 = vsyncpa [#allocation15], 0 }
  0x13   :  { %38 = vsyncpa [#allocation18], 0 }
  0x14   :  { %39 = vsyncpa [#allocation21], 0 }
  0x15   :  { %40 = vsyncpa [#allocation4], 0 }
  0x16   :  { %41 = vsyncpa [#allocation24], 0  ;;  %s3042_s8 = sld [smem:[#allocation36_spill]]  ;;  %s2323_s9 = smov [#allocation5]  }
  0x17   :  { %s63_s5 = sshll.u32 %s2323_s9, 4  ;;  %s3043_s10 = sld [smem:[#allocation39_spill]]  ;;  %s64_s5 = int_to_ptr.vmem [resolvable:$true] %s63_s5 }
  0x18   :  { %s2324_s1 = smov 128   ;;  %s2325_s6 = smov 8  }
  0x19   :  { %s2326_s11 = smov [#allocation8]   ;;  %s3044_s4 = sld [smem:[#allocation44_spill]] }
  0x1a   :  { %s91_s2 = sshll.u32 %s2326_s11, 4  ;;  %s155_s0 = sshll.u32 %s3012_s16, 4  ;;  %s92_s2 = int_to_ptr.vmem [resolvable:$true] %s91_s2  ;;  %s156_s0 = int_to_ptr.hbm [resolvable:$true] %s155_s0 }
  0x1b   :  { %s185_s7 = sshll.u32 %s3016_s20, 4  ;;  %s2329_s9 = smov [#allocation17]   ;;  %s186_s7 = int_to_ptr.hbm [resolvable:$true] %s185_s7 }
  0x1c   :  { %s61_s30 = sshll.u32 %s3042_s8, 4  ;;  %s187_s28 = sshll.u32 %s2329_s9, 4  ;;  %s62_s30 = int_to_ptr.hbm [resolvable:$true] %s61_s30  ;;  %s188_s28 = int_to_ptr.vmem [resolvable:$true] %s187_s28 }
  0x1d   :  { %s89_s29 = sshll.u32 %s3043_s10, 4  ;;  %s2327_s10 = smov [#allocation11]   ;;  %s90_s29 = int_to_ptr.hbm [resolvable:$true] %s89_s29 }
  0x1e   :  { %69 = dma.hbm_to_vmem [thread:$0]  %s62_s30, 768, %s64_s5, [#allocation6], %s2324_s1, %s2324_s1, %s2325_s6  }
  0x1f   :  { %s121_s8 = sshll.u32 %s3044_s4, 4  ;;  %s123_s27 = sshll.u32 %s2327_s10, 4  ;;  %s122_s8 = int_to_ptr.hbm [resolvable:$true] %s121_s8  ;;  %s124_s27 = int_to_ptr.vmem [resolvable:$true] %s123_s27 }
  0x20   :  { %97 = dma.hbm_to_vmem [thread:$0]  %s90_s29, 768, %s92_s2, [#allocation9], %s2324_s1, %s2324_s1, %s2325_s6  }
  0x21   :  { %129 = dma.hbm_to_vmem [thread:$0]  %s122_s8, 256, %s124_s27, [#allocation12], %s2324_s1, %s2324_s1, %s2325_s6  }
  0x22   :  { %s2328_s30 = smov [#allocation14]   ;;  %s3045_s2 = sld [smem:[#allocation34_spill]] }
  0x23   :  { %s157_s5 = sshll.u32 %s2328_s30, 4  ;;  %s2330_s27 = smov [#allocation2]   ;;  %s158_s5 = int_to_ptr.vmem [resolvable:$true] %s157_s5 }
  0x24   :  { %163 = dma.hbm_to_vmem [thread:$0]  %s156_s0, 1024, %s158_s5, [#allocation15], %s2324_s1, %s2324_s1, %s2325_s6  }
  0x25   :  { %193 = dma.hbm_to_vmem [thread:$0]  %s186_s7, 512, %s188_s28, [#allocation18], %s2324_s1, %s2324_s1, %s2325_s6  }
  0x26   :  { %s48_s20 = sshll.u32 %s2330_s27, 4  ;;  %s3046_s30 = sld [smem:[#allocation37_spill]]  ;;  %s49_s20 = int_to_ptr.vmem [resolvable:$true] %s48_s20 }
  0x27   :  { %s3047_s3 = sld [smem:[#allocation40_spill]]  ;;  %s2331_s29 = smov [#allocation7]  }
  0x28   :  { %s46_s4 = sshll.u32 %s3045_s2, 4  ;;  %s76_s2 = sshll.u32 %s2331_s29, 4  ;;  %s47_s4 = int_to_ptr.hbm [resolvable:$true] %s46_s4  ;;  %s77_s2 = int_to_ptr.vmem [resolvable:$true] %s76_s2 }
  0x29   :  { %54 = dma.hbm_to_vmem [thread:$0]  %s47_s4, 256, %s49_s20, [#allocation3], %s2324_s1, %s2324_s1, %s2325_s6  }
  0x2a   :  { %s2332_s7 = smov [#allocation10]   ;;  %s136_s8 = sshll.u32 %s3008_s12, 4  ;;  %s137_s8 = int_to_ptr.hbm [resolvable:$true] %s136_s8 }
  0x2b   :  { %s104_s9 = sshll.u32 %s2332_s7, 4  ;;  %s168_s10 = sshll.u32 %s3013_s17, 4  ;;  %s105_s9 = int_to_ptr.vmem [resolvable:$true] %s104_s9  ;;  %s169_s10 = int_to_ptr.hbm [resolvable:$true] %s168_s10 }
  0x2c   :  { %s74_s11 = sshll.u32 %s3046_s30, 4  ;;  %s2333_s30 = smov [#allocation13]   ;;  %s75_s11 = int_to_ptr.hbm [resolvable:$true] %s74_s11 }
  0x2d   :  { %s102_s16 = sshll.u32 %s3047_s3, 4  ;;  %s138_s0 = sshll.u32 %s2333_s30, 4  ;;  %s103_s16 = int_to_ptr.hbm [resolvable:$true] %s102_s16  ;;  %s139_s0 = int_to_ptr.vmem [resolvable:$true] %s138_s0 }
  0x2e   :  { %82 = dma.hbm_to_vmem [thread:$0]  %s75_s11, 512, %s77_s2, [#allocation6], %s2324_s1, %s2324_s1, %s2325_s6  }
  0x2f   :  { %110 = dma.hbm_to_vmem [thread:$0]  %s103_s16, 768, %s105_s9, [#allocation9], %s2324_s1, %s2324_s1, %s2325_s6  }
  0x30   :  { %144 = dma.hbm_to_vmem [thread:$0]  %s137_s8, 256, %s139_s0, [#allocation12], %s2324_s1, %s2324_s1, %s2325_s6  }
  0x31   :  { %s2334_s11 = smov [#allocation16]   ;;  %s200_s29 = sshll.u32 %s3018_s22, 4  ;;  %s201_s29 = int_to_ptr.hbm [resolvable:$true] %s200_s29 }
  0x32   :  { %s170_s12 = sshll.u32 %s2334_s11, 4  ;;  %s215_s2 = sshll.u32 %s3020_s24, 4  ;;  %s171_s12 = int_to_ptr.vmem [resolvable:$true] %s170_s12  ;;  %s216_s2 = int_to_ptr.hbm [resolvable:$true] %s215_s2 }
  0x33   :  { %176 = dma.hbm_to_vmem [thread:$0]  %s169_s10, 1024, %s171_s12, [#allocation15], %s2324_s1, %s2324_s1, %s2325_s6  }
  0x34   :  { %s2335_s7 = smov [#allocation19]   ;;  %s2336_s28 = smov [#allocation20]  }
  0x35   :  { %s202_s9 = sshll.u32 %s2335_s7, 4  ;;  %s217_s22 = sshll.u32 %s2336_s28, 4  ;;  %s203_s9 = int_to_ptr.vmem [resolvable:$true] %s202_s9  ;;  %s218_s22 = int_to_ptr.vmem [resolvable:$true] %s217_s22 }
  0x36   :  { %208 = dma.hbm_to_vmem [thread:$0]  %s201_s29, 512, %s203_s9, [#allocation18], %s2324_s1, %s2324_s1, %s2325_s6  }
  0x37   :  { %223 = dma.hbm_to_vmem [thread:$0]  %s216_s2, 512, %s218_s22, [#allocation21], %s2324_s1, %s2324_s1, %s2325_s6  }
  0x38   :  { %2305 = dma.done.wait [#allocation3], 256  }
  0x39   :  { %2306 = vsyncadd [#allocation3], 4294967040 }
  0x3a   :  { %2307 = dma.done.wait [#allocation6], 1280  }
  0x3b   :  { %2308 = vsyncadd [#allocation6], 4294966016 }
  0x3c   :  { %2309 = dma.done.wait [#allocation9], 1536  }
  0x3d   :  { %2310 = vsyncadd [#allocation9], 4294965760 }
  0x3e   :  { %2311 = dma.done.wait [#allocation12], 512  }
  0x3f   :  { %2312 = vsyncadd [#allocation12], 4294966784 }
  0x40   :  { %2313 = dma.done.wait [#allocation15], 2048  }
  0x41   :  { %2314 = vsyncadd [#allocation15], 4294965248 }
  0x42   :  { %2315 = dma.done.wait [#allocation18], 1024  }
  0x43   :  { %2316 = vsyncadd [#allocation18], 4294966272 }
  0x44   :  { %2317 = dma.done.wait [#allocation21], 512  }
  0x45   :  { %2318 = vsyncadd [#allocation21], 4294966784  ;;  %v2551_v0 = vld [vmem:[#allocation2 + $0x8] sm:$0xff]  ;;  %v2553_v1 = vld [vmem:[#allocation2] sm:$0xff]  ;;  %vm281_vm0 = vcmask 130048   ;;  %vm355_vm1 = vcmask 1043456  }
  0x46   :  { %302 = vmatpush.msra.mxu0 %v2551_v0  ;;  %336 = vmatpush.msra.mxu2 %v2551_v0  ;;  %v2557_v2 = vld [vmem:[#allocation5] sm:$0xff]  ;;  %v2559_v3 = vld [vmem:[#allocation5 + $0x10] sm:$0xff]  ;;  %v312_v4 = vld [vmem:[#allocation10 + $0x8] sm:$0xf]  ;;  %s3048_s8 = sld [smem:[#allocation35_spill]]  ;;  %vm348_vm2 = vcmask 97280  }
  0x47   :  { %1819 = vmatpush.msk.msra.mxu3 %vm355_vm1, %v312_v4  ;;  %v2570_v5 = vld [vmem:[#allocation5 + $0x8] sm:$0xff]  ;;  %v2572_v6 = vld [vmem:[#allocation5 + $0x18] sm:$0xff]  ;;  %v2578_v7 = vld [vmem:[#allocation5 + $0x20] sm:$0xff]  ;;  %vm485_vm3 = vcmask 195584   ;;  %s3049_s12 = sld [smem:[#allocation41_spill]]  ;;  %vm559_vm4 = vcmask 1041408  }
  0x48   :  { %303 = vmatpush.msra.mxu0 %v2553_v1  ;;  %337 = vmatpush.msra.mxu2 %v2553_v1  ;;  %v2582_v8 = vld [vmem:[#allocation5 + $0x28] sm:$0xff]  ;;  %v311_v9 = vld [vmem:[#allocation10] sm:$0xff]  ;;  %v347_v10 = vld [vmem:[#allocation10 + $0x18] sm:$0xf]  ;;  %s3050_s7 = sld [smem:[#allocation38_spill]]  ;;  %vm552_vm5 = vcmask 80896  }
  0x49   :  { %1812 = vmatmul.msk.f32.vlgmr.msra.gmra.mxu0 %vm281_vm0, %v2557_v2  ;;  %1814 = vmatmul.msk.f32.vlgmr.msra.gmra.mxu2 %vm281_vm0, %v2559_v3  ;;  %v346_v11 = vld [vmem:[#allocation10 + $0x10] sm:$0xff]  ;;  %v448_v13 = vld [vmem:[#allocation10 + $0x28] sm:$0xf]  ;;  %v447_v15 = vld [vmem:[#allocation10 + $0x20] sm:$0xff]  ;;  %s3051_s3 = sld [smem:[#allocation42_spill]]  ;;  %vm1091_vm6 = vcmask 261120  }
  0x4a   :  { %437 = vmatpush.msrb.mxu0 %v2551_v0  ;;  %406 = vmatpush.msra.mxu3 %v311_v9  ;;  %v2614_v21 = vld [vmem:[#allocation7 + $0x10] sm:$0xff]  ;;  %v2621_v23 = vld [vmem:[#allocation7] sm:$0xff]  ;;  %v2624_v24 = vld [vmem:[#allocation7 + $0x18] sm:$0xff]  ;;  %s3052_s24 = sld [smem:[#allocation43_spill]] }
  0x4b   :  { %1816 = vmatpush.msk.msrb.mxu2 %vm355_vm1, %v347_v10  ;;  %1824 = vmatpush.msk.msra.mxu1 %vm355_vm1, %v448_v13  ;;  %v2632_v26 = vld [vmem:[#allocation7 + $0x8] sm:$0xff]  ;;  %v620_v31 = vld [vmem:[#allocation11] sm:$0xff]  ;;  %v2700_v45 = vld [vmem:[#allocation8 + $0x10] sm:$0xff]  ;;  %s3054_s0 = sld [smem:[#allocation46_spill]] }
  0x4c   :  { %438 = vmatpush.msrb.mxu0 %v2553_v1  ;;  %v2590_v12 = vld [vmem:[%s3048_s8 + $0x10] sm:$0xff]  ;;  %v2597_v14 = vld [vmem:[%s3048_s8 + $0x8] sm:$0xff]  ;;  %v2604_v16 = vld [vmem:[%s3048_s8] sm:$0xff]  ;;  %s1775_s8 = sshll.u32 %s3022_s26, 4  ;;  %s2338_s26 = smov [#allocation23]   ;;  %s1776_s8 = int_to_ptr.hbm [resolvable:$true] %s1775_s8 }
  0x4d   :  { %374 = vmatpush.msrb.mxu2 %v346_v11  ;;  %539 = vmatpush.msrb.mxu3 %v2590_v12  ;;  %v1832_v27 = vld [vmem:[%s3049_s12 + $0x18] sm:$0x3]  ;;  %v1831_v28 = vld [vmem:[%s3049_s12 + $0x10] sm:$0xff]  ;;  %v621_v29 = vld [vmem:[#allocation11 + $0x8] sm:$0xf] }
  0x4e   :  { %473 = vmatpush.msra.mxu1 %v447_v15  ;;  %1833 = vmatpush.msk.msra.mxu0 %vm559_vm4, %v1832_v27  ;;  %v516_v30 = vld [vmem:[%s3049_s12 + $0x8] sm:$0x3]  ;;  %v2651_v32 = vld [vmem:[%s3050_s7] sm:$0xff]  ;;  %v2676_v36 = vld [vmem:[%s3050_s7 + $0x10] sm:$0xff] }
  0x4f   :  { %505 = vmatpush.msra.mxu2 %v2590_v12  ;;  %540 = vmatpush.msrb.mxu3 %v2597_v14  ;;  %v515_v33 = vld [vmem:[%s3049_s12] sm:$0xff]  ;;  %v2665_v34 = vld [vmem:[%s3050_s7 + $0x8] sm:$0xff]  ;;  %v2707_v47 = vld [vmem:[%s3050_s7 + $0x18] sm:$0xff]  ;;  %s3053_s12 = sld [smem:[#allocation45_spill]] }
  0x50   :  { %578 = vmatpush.msra.mxu0 %v1831_v28  ;;  %1836 = vmatpush.msk.msrb.mxu1 %vm559_vm4, %v516_v30  ;;  %v2684_v39 = vld [vmem:[#allocation8] sm:$0xff]  ;;  %v2692_v42 = vld [vmem:[#allocation8 + $0x8] sm:$0xff]  ;;  %v2726_v50 = vld [vmem:[#allocation8 + $0x18] sm:$0xff] }
  0x51   :  { %1813 = vmatmul.msk.f32.gmra.mxu0 %vm281_vm0, %v2570_v5  ;;  %1815 = vmatmul.msk.f32.gmra.mxu2 %vm281_vm0, %v2572_v6  ;;  %v2715_v48 = vld [vmem:[%s3050_s7 + $0x20] sm:$0xff]  ;;  %v2722_v49 = vld [vmem:[%s3050_s7 + $0x28] sm:$0xff]  ;;  %v1852_v56 = vld [vmem:[%s3051_s3 + $0x18] sm:$0xf]  ;;  %s1788_s11 = sshll.u32 %s3054_s0, 4  ;;  %s1789_s11 = int_to_ptr.hbm [resolvable:$true] %s1788_s11 }
  0x52   :  { %506 = vmatpush.msra.mxu2 %v2597_v14  ;;  %541 = vmatpush.msrb.mxu3 %v2604_v16  ;;  %v2730_v51 = vld [vmem:[#allocation8 + $0x20] sm:$0xff]  ;;  %v2734_v52 = vld [vmem:[#allocation8 + $0x28] sm:$0xff]  ;;  %v1851_v57 = vld [vmem:[%s3051_s3 + $0x10] sm:$0xff] }
  0x53   :  { %610 = vmatpush.msrb.mxu1 %v515_v33  ;;  %v701_v53 = vld [vmem:[%s3051_s3 + $0x8] sm:$0xf]  ;;  %v700_v54 = vld [vmem:[%s3051_s3] sm:$0xff]  ;;  %v1868_v60 = vld [vmem:[%s3052_s24 + $0x18] sm:$0x3] }
  0x54   :  { %507 = vmatpush.msra.mxu2 %v2604_v16  ;;  %v859_v61 = vld [vmem:[%s3052_s24 + $0x8] sm:$0x3]  ;;  %v1867_v62 = vld [vmem:[%s3052_s24 + $0x10] sm:$0xff]  ;;  %v858_v9 = vld [vmem:[%s3052_s24] sm:$0xff] }
  0x55   :  { %v981_v11 = vld [vmem:[#allocation13] sm:$0xff] }
  0x59   :  { %1822 = vmatmul.msk.f32.vlgmr.msrb.gmra.mxu0 %vm281_vm0, %v2578_v7 }
  0x5a   :  { %729 = vmatpush.msrb.mxu0 %v2551_v0 }
  0x5c   :  { %730 = vmatpush.msrb.mxu0 %v2553_v1 }
  0x61   :  { %1823 = vmatmul.msk.f32.gmra.mxu0 %vm281_vm0, %v2582_v8 }
  0xc6   :  { %v305_v17 = vpop.f32.mrf.mxu0 }
  0xc7   :  { %1820 = vmatmul.msk.f32.vlgmr.msra.gmra.mxu3 %vm348_vm2, %v305_v17 }
  0xc8   :  { %688 = vmatpush.msra.mxu3 %v2551_v0 }
  0xca   :  { %689 = vmatpush.msra.mxu3 %v2553_v1 }
  0xcc   :  { %v339_v18 = vpop.f32.mrf.mxu2 }
  0xcd   :  { %1817 = vmatmul.msk.f32.vlgmr.msrb.gmra.mxu2 %vm348_vm2, %v339_v18 }
  0xce   :  { %v308_v19 = vpop.f32.mrf.mxu0  ;;  %1839 = vmatpush.msk.msrb.mxu2 %vm355_vm1, %v621_v29 }
  0xcf   :  { %1821 = vmatmul.msk.f32.gmra.mxu3 %vm348_vm2, %v308_v19 }
  0xd0   :  { %646 = vmatpush.msrb.mxu2 %v620_v31 }
  0xd4   :  { %v342_v20 = vpop.f32.mrf.mxu2 }
  0xd5   :  { %1818 = vmatmul.msk.f32.gmra.mxu2 %vm348_vm2, %v342_v20 }
  0xd6   :  { %v440_v22 = vpop.f32.mrf.mxu0 }
  0xd7   :  { %1825 = vmatmul.msk.f32.vlgmr.msra.gmra.mxu1 %vm348_vm2, %v440_v22  ;;  %1829 = vmatmul.msk.f32.vlgmr.msrb.gmra.mxu3 %vm485_vm3, %v2614_v21 }
  0xd8   :  { %845 = vmatpush.msrb.mxu3 %v2590_v12  ;;  %1853 = vmatpush.msk.msra.mxu1 %vm355_vm1, %v1852_v56 }
  0xda   :  { %846 = vmatpush.msrb.mxu3 %v2597_v14  ;;  %771 = vmatpush.msra.mxu1 %v1851_v57 }
  0xdc   :  { %847 = vmatpush.msrb.mxu3 %v2604_v16 }
  0xdd   :  { %1827 = vmatmul.msk.f32.vlgmr.msra.gmra.mxu2 %vm485_vm3, %v2621_v23 }
  0xde   :  { %v443_v25 = vpop.f32.mrf.mxu0  ;;  %1857 = vmatpush.msk.msra.mxu2 %vm355_vm1, %v701_v53  ;;  %v1907_v53 = vld [vmem:[%s3011_s15 + $0x30] sm:$0xff] }
  0xdf   :  { %1826 = vmatmul.msk.f32.gmra.mxu1 %vm348_vm2, %v443_v25  ;;  %1830 = vmatmul.msk.f32.gmra.mxu3 %vm485_vm3, %v2624_v24 }
  0xe0   :  { %809 = vmatpush.msra.mxu2 %v700_v54 }
  0xe5   :  { %1828 = vmatmul.msk.f32.gmra.mxu2 %vm485_vm3, %v2632_v26 }
  0xe7   :  { %1842 = vmatmul.msk.f32.vlgmr.msra.gmra.mxu3 %vm281_vm0, %v2651_v32 }
  0xed   :  { %1840 = vmatmul.msk.f32.vlgmr.msrb.gmra.mxu2 %vm348_vm2, %v2553_v1 }
  0xee   :  { %1873 = vmatpush.msk.msrb.mxu2 %vm559_vm4, %v859_v61 }
  0xef   :  { %1843 = vmatmul.msk.f32.gmra.mxu3 %vm281_vm0, %v2665_v34 }
  0xf0   :  { %967 = vmatpush.msrb.mxu2 %v858_v9 }
  0xf5   :  { %1841 = vmatmul.msk.f32.gmra.mxu2 %vm348_vm2, %v2551_v0  ;;  %v982_v0 = vld [vmem:[#allocation13 + $0x8] sm:$0x3] }
  0xf6   :  { %1877 = vmatpush.msk.msra.mxu3 %vm559_vm4, %v982_v0 }
  0xf7   :  { %1844 = vmatmul.msk.f32.gmra.mxu3 %vm281_vm0, %v2676_v36 }
  0xf8   :  { %1010 = vmatpush.msra.mxu3 %v981_v11 }
  0xff   :  { %1861 = vmatmul.msk.f32.vlgmr.msrb.gmra.mxu3 %vm485_vm3, %v2684_v39 }
 0x107   :  { %1862 = vmatmul.msk.f32.gmra.mxu3 %vm485_vm3, %v2692_v42 }
 0x10f   :  { %1863 = vmatmul.msk.f32.gmra.mxu3 %vm485_vm3, %v2700_v45 }
 0x117   :  { %1878 = vmatmul.msk.f32.vlgmr.msra.gmra.mxu3 %vm552_vm5, %v2604_v16 }
 0x11f   :  { %1879 = vmatmul.msk.f32.gmra.mxu3 %vm552_vm5, %v2597_v14 }
 0x127   :  { %1880 = vmatmul.msk.f32.gmra.mxu3 %vm552_vm5, %v2590_v12 }
 0x14a   :  { %v2671_v35 = vpop.f32.mrf.mxu3 }
 0x150   :  { %v2680_v37 = vpop.f32.mrf.mxu2 }
 0x151   :  { %v409_v18 = vadd.f32 %v2671_v35, %v2680_v37  ;;  %v1963_v35 = vld [vmem:[%s3053_s12] ss:$0 sm:$0xff] }
 0x152   :  { %v2682_v38 = vpop.f32.mrf.mxu3 }
 0x154   :  { %v475_v59 = vpop.f32.mrf.mxu1 }
 0x155   :  { %v481_v22 = vadd.f32 %v475_v59, %v409_v18 }
 0x158   :  { %v2688_v40 = vpop.f32.mrf.mxu2 }
 0x159   :  { %v412_v25 = vadd.f32 %v2682_v38, %v2688_v40 }
 0x15a   :  { %v543_v41 = vpop.f32.mrf.mxu3 }
 0x15b   :  { %1834 = vmatmul.msk.f32.vlgmr.msra.gmra.mxu0 %vm552_vm5, %v543_v41 }
 0x15c   :  { %886 = vmatpush.msra.mxu0 %v2590_v12  ;;  %v478_v1 = vpop.f32.mrf.mxu1  ;;  %v1908_v12 = vld [vmem:[%s3011_s15 + $0x38] sm:$0xff] }
 0x15d   :  { %v482_v29 = vadd.f32 %v478_v1, %v412_v25  ;;  %v1887_v1 = vld [vmem:[%s3010_s14 + $0x30] sm:$0xff] }
 0x15e   :  { %887 = vmatpush.msra.mxu0 %v2597_v14 }
 0x160   :  { %v509_v43 = vpop.f32.mrf.mxu2  ;;  %888 = vmatpush.msra.mxu0 %v2604_v16 }
 0x161   :  { %1837 = vmatmul.msk.f32.vlgmr.msrb.gmra.mxu1 %vm552_vm5, %v509_v43 }
 0x162   :  { %v546_v44 = vpop.f32.mrf.mxu3  ;;  %1869 = vmatpush.msk.msrb.mxu1 %vm559_vm4, %v1868_v60 }
 0x163   :  { %1835 = vmatmul.msk.f32.gmra.mxu0 %vm552_vm5, %v546_v44 }
 0x164   :  { %929 = vmatpush.msrb.mxu1 %v1867_v62 }
 0x168   :  { %v512_v46 = vpop.f32.mrf.mxu2 }
 0x169   :  { %1838 = vmatmul.msk.f32.gmra.mxu1 %vm552_vm5, %v512_v46 }
 0x16a   :  { %v691_v55 = vpop.f32.mrf.mxu3 }
 0x16b   :  { %1848 = vmatmul.msk.f32.vlgmr.msrb.gmra.mxu0 %vm281_vm0, %v2707_v47  ;;  %1858 = vmatmul.msk.f32.vlgmr.msra.gmra.mxu2 %vm348_vm2, %v691_v55  ;;  %v1905_v55 = vld [vmem:[%s3011_s15 + $0x20] sm:$0xff] }
 0x170   :  { %v648_v15 = vpop.f32.mrf.mxu2 }
 0x172   :  { %v694_v58 = vpop.f32.mrf.mxu3 }
 0x173   :  { %1849 = vmatmul.msk.f32.gmra.mxu0 %vm281_vm0, %v2715_v48  ;;  %1859 = vmatmul.msk.f32.gmra.mxu2 %vm348_vm2, %v694_v58  ;;  %v1062_v58 = vld [vmem:[%s3010_s14 + $0x18] sm:$0xff] }
 0x174   :  { %1139 = vmatpush.msrb.mxu3 %v1062_v58 }
 0x178   :  { %v651_v31 = vpop.f32.mrf.mxu2 }
 0x17a   :  { %v697_v63 = vpop.f32.mrf.mxu3 }
 0x17b   :  { %1850 = vmatmul.msk.f32.gmra.mxu0 %vm281_vm0, %v2722_v49  ;;  %1860 = vmatmul.msk.f32.gmra.mxu2 %vm348_vm2, %v697_v63  ;;  %v1888_v63 = vld [vmem:[%s3010_s14 + $0x38] sm:$0xff] }
 0x17c   :  { %1110 = vmatpush.msra.mxu2 %v1888_v63  ;;  %v1324_v63 = vld [vmem:[%s3014_s18] sm:$0xff] }
 0x17e   :  { %1111 = vmatpush.msra.mxu2 %v1887_v1  ;;  %v1631_v1 = vld [vmem:[#allocation17 + $0x8] sm:$0xff] }
 0x182   :  { %v849_v10 = vpop.f32.mrf.mxu3 }
 0x183   :  { %1864 = vmatmul.msk.f32.vlgmr.msra.gmra.mxu0 %vm485_vm3, %v2726_v50  ;;  %1874 = vmatmul.msk.f32.vlgmr.msrb.gmra.mxu2 %vm552_vm5, %v849_v10  ;;  %v1885_v10 = vld [vmem:[%s3010_s14 + $0x20] sm:$0xff] }
 0x18a   :  { %v852_v20 = vpop.f32.mrf.mxu3 }
 0x18b   :  { %1865 = vmatmul.msk.f32.gmra.mxu0 %vm485_vm3, %v2730_v51  ;;  %1875 = vmatmul.msk.f32.gmra.mxu2 %vm552_vm5, %v852_v20 }
 0x192   :  { %v855_v41 = vpop.f32.mrf.mxu3 }
 0x193   :  { %1866 = vmatmul.msk.f32.gmra.mxu0 %vm485_vm3, %v2734_v52  ;;  %1876 = vmatmul.msk.f32.gmra.mxu2 %vm552_vm5, %v855_v41 }
 0x19a   :  { %v1012_v18 = vpop.f32.mrf.mxu3 }
 0x1d8   :  { %v580_v4 = vpop.f32.mrf.mxu0 }
 0x1de   :  { %v612_v13 = vpop.f32.mrf.mxu1 }
 0x1df   :  { %v613_v19 = vadd.f32 %v612_v13, %v580_v4  ;;  %v1886_v4 = vld [vmem:[%s3010_s14 + $0x28] sm:$0xff]  ;;  %v1898_v13 = vld [vmem:[%s3010_s14 + $0x58] sm:$0xff] }
 0x1e0   :  { %v583_v17 = vpop.f32.mrf.mxu0  ;;  %1112 = vmatpush.msra.mxu2 %v1886_v4 }
 0x1e1   :  { %v618_v27 = vadd.f32 %v613_v19, %v481_v22  ;;  %v1896_v19 = vld [vmem:[%s3010_s14 + $0x48] sm:$0xff]  ;;  %v1895_v22 = vld [vmem:[%s3010_s14 + $0x40] sm:$0xff] }
 0x1e2   :  { %1113 = vmatpush.msra.mxu2 %v1885_v10 }
 0x1e3   :  { %v654_v33 = vadd.f32 %v648_v15, %v618_v27 }
 0x1e5   :  { %v660_v38 = vadd.f32 %v1963_v35, %v654_v33 }
 0x1e6   :  { %v615_v28 = vpop.f32.mrf.mxu1 }
 0x1e7   :  { %v616_v30 = vadd.f32 %v615_v28, %v583_v17  ;;  %v2789_v46 = vmax.f32 %v660_v38, 0.0  ;;  %v1897_v17 = vld [vmem:[%s3010_s14 + $0x50] sm:$0xff] }
 0x1e8   :  { %v732_v16 = vpop.f32.mrf.mxu0 }
 0x1e9   :  { %1854 = vmatmul.msk.f32.vlgmr.msra.gmra.mxu1 %vm348_vm2, %v732_v16  ;;  %v619_v37 = vadd.f32 %v616_v30, %v482_v29  ;;  %v1015_v29 = vpop.f32.mrf.mxu3 }
 0x1eb   :  { %v655_v43 = vadd.f32 %v651_v31, %v619_v37 }
 0x1ed   :  { %v661_v40 = vadd.f32 %v1963_v35, %v655_v43 }
 0x1ef   :  { %v2787_v14 = vmax.f32 %v661_v40, 0.0 }
 0x1f0   :  { %v735_v44 = vpop.f32.mrf.mxu0 }
 0x1f1   :  { %1855 = vmatmul.msk.f32.gmra.mxu1 %vm348_vm2, %v735_v44  ;;  %1050 = vmatpush.msrb.mxu0 %v2787_v14 }
 0x1f2   :  { %1077 = vmatpush.msra.mxu1 %v2787_v14 }
 0x1f3   :  { %1051 = vmatpush.msrb.mxu0 %v2789_v46 }
 0x1f4   :  { %1078 = vmatpush.msra.mxu1 %v2789_v46  ;;  %1881 = vmatmul.msk.f32.vlgmr.msrb.gmra.mxu0 %vm281_vm0, %v2557_v2  ;;  %v1906_v2 = vld [vmem:[%s3011_s15 + $0x28] sm:$0xff] }
 0x1f5   :  { %1164 = vmatpush.msra.mxu0 %v2787_v14 }
 0x1f7   :  { %1165 = vmatpush.msra.mxu0 %v2789_v46 }
 0x1f8   :  { %v738_v54 = vpop.f32.mrf.mxu0 }
 0x1f9   :  { %1282 = vmatpush.msrb.mxu0 %v1908_v12  ;;  %1856 = vmatmul.msk.f32.gmra.mxu1 %vm348_vm2, %v738_v54  ;;  %v1018_v12 = vpop.f32.mrf.mxu3 }
 0x1fb   :  { %1283 = vmatpush.msrb.mxu0 %v1907_v53 }
 0x1fc   :  { %1882 = vmatmul.msk.f32.gmra.mxu0 %vm281_vm0, %v2570_v5 }
 0x1fd   :  { %1284 = vmatpush.msrb.mxu0 %v1906_v2 }
 0x1ff   :  { %1285 = vmatpush.msrb.mxu0 %v1905_v55  ;;  %v1964_v55 = vld [vmem:[%s3009_s13] ss:$0 sm:$0xff]  ;;  %s1786_s13 = sshll.u32 %s2338_s26, 4  ;;  %s1787_s13 = int_to_ptr.vmem [resolvable:$true] %s1786_s13 }
 0x200   :  { %v890_v56 = vpop.f32.mrf.mxu0 }
 0x201   :  { %1870 = vmatmul.msk.f32.vlgmr.msrb.gmra.mxu1 %vm552_vm5, %v890_v56 }
 0x202   :  { %1196 = vmatpush.msrb.mxu1 %v1898_v13 }
 0x204   :  { %1893 = vmatmul.msk.f32.vlgmr.msra.gmra.mxu0 %vm281_vm0, %v2578_v7  ;;  %v811_v7 = vpop.f32.mrf.mxu2  ;;  %1197 = vmatpush.msrb.mxu1 %v1897_v17  ;;  %v1392_v17 = vld [vmem:[#allocation14 + $0x8] sm:$0xff] }
 0x205   :  { %1409 = vmatpush.msra.mxu0 %v2787_v14 }
 0x206   :  { %1198 = vmatpush.msrb.mxu1 %v1896_v19  ;;  %v1391_v19 = vld [vmem:[#allocation14] sm:$0xff] }
 0x207   :  { %1410 = vmatpush.msra.mxu0 %v2789_v46 }
 0x208   :  { %v893_v57 = vpop.f32.mrf.mxu0  ;;  %1199 = vmatpush.msrb.mxu1 %v1895_v22  ;;  %v1422_v22 = vld [vmem:[#allocation14 + $0x20] sm:$0xff] }
 0x209   :  { %1871 = vmatmul.msk.f32.gmra.mxu1 %vm552_vm5, %v893_v57 }
 0x20c   :  { %1894 = vmatmul.msk.f32.gmra.mxu0 %vm281_vm0, %v2582_v8  ;;  %v814_v59 = vpop.f32.mrf.mxu2  ;;  %v1061_v8 = vld [vmem:[%s3010_s14 + $0x10] sm:$0xff] }
 0x20d   :  { %1140 = vmatpush.msrb.mxu3 %v1061_v8 }
 0x210   :  { %v896_v5 = vpop.f32.mrf.mxu0 }
 0x211   :  { %1872 = vmatmul.msk.f32.gmra.mxu1 %vm552_vm5, %v896_v5 }
 0x214   :  { %v817_v62 = vpop.f32.mrf.mxu2 }
 0x219   :  { %1883 = vmatmul.msk.f32.vlgmr.msra.gmra.mxu1 %vm281_vm0, %v2559_v3  ;;  %v1060_v3 = vld [vmem:[%s3010_s14 + $0x8] sm:$0xff] }
 0x21a   :  { %1141 = vmatpush.msrb.mxu3 %v1060_v3  ;;  %v1327_v3 = vld [vmem:[%s3014_s18 + $0x18] sm:$0xff] }
 0x21c   :  { %v969_v11 = vpop.f32.mrf.mxu2 }
 0x221   :  { %1884 = vmatmul.msk.f32.gmra.mxu1 %vm281_vm0, %v2572_v6  ;;  %v1059_v6 = vld [vmem:[%s3010_s14] sm:$0xff] }
 0x222   :  { %1142 = vmatpush.msrb.mxu3 %v1059_v6  ;;  %v1326_v6 = vld [vmem:[%s3014_s18 + $0x10] sm:$0xff] }
 0x224   :  { %v972_v27 = vpop.f32.mrf.mxu2 }
 0x22c   :  { %v975_v35 = vpop.f32.mrf.mxu2 }
 0x266   :  { %v773_v60 = vpop.f32.mrf.mxu1 }
 0x267   :  { %v812_v37 = vadd.f32 %v811_v7, %v773_v60 }
 0x26e   :  { %v776_v61 = vpop.f32.mrf.mxu1 }
 0x26f   :  { %v815_v31 = vadd.f32 %v814_v59, %v776_v61 }
 0x271   :  { %v1053_v0 = vpop.f32.mrf.mxu0 }
 0x272   :  { %1891 = vmatmul.msk.f32.vlgmr.msrb.gmra.mxu3 %vm1091_vm6, %v1053_v0  ;;  %v1632_v0 = vld [vmem:[#allocation17 + $0x10] sm:$0xff] }
 0x276   :  { %v779_v9 = vpop.f32.mrf.mxu1 }
 0x277   :  { %v818_v38 = vadd.f32 %v817_v62, %v779_v9  ;;  %v1325_v62 = vld [vmem:[%s3014_s18 + $0x8] sm:$0xff] }
 0x279   :  { %v1056_v15 = vpop.f32.mrf.mxu0 }
 0x27a   :  { %1892 = vmatmul.msk.f32.gmra.mxu3 %vm1091_vm6, %v1056_v15  ;;  %v1394_v15 = vld [vmem:[#allocation14 + $0x18] sm:$0xff] }
 0x27e   :  { %v931_v20 = vpop.f32.mrf.mxu1 }
 0x27f   :  { %v970_v33 = vadd.f32 %v969_v11, %v931_v20  ;;  %v1680_v20 = vld [vmem:[#allocation19 + $0x8] sm:$0xff] }
 0x281   :  { %v1167_v25 = vpop.f32.mrf.mxu0  ;;  %v978_v40 = vadd.f32 %v970_v33, %v812_v37 }
 0x282   :  { %1899 = vmatmul.msk.f32.vlgmr.msrb.gmra.mxu1 %vm1091_vm6, %v1167_v25  ;;  %v1679_v25 = vld [vmem:[#allocation19] sm:$0xff] }
 0x283   :  { %v1021_v2 = vadd.f32 %v1012_v18, %v978_v40  ;;  %v1425_v18 = vld [vmem:[#allocation14 + $0x38] sm:$0xff] }
 0x285   :  { %v1028_v59 = vadd.f32 %v1964_v55, %v1021_v2 }
 0x286   :  { %v934_v28 = vpop.f32.mrf.mxu1 }
 0x287   :  { %v973_v30 = vadd.f32 %v972_v27, %v934_v28  ;;  %v1033_v60 = vmax.f32 %v1028_v59, 0.0 }
 0x289   :  { %v1170_v16 = vpop.f32.mrf.mxu0  ;;  %v979_v41 = vadd.f32 %v973_v30, %v815_v31  ;;  %v1556_v30 = vld [vmem:[#allocation16 + $0x38] sm:$0xff] }
 0x28a   :  { %1900 = vmatmul.msk.f32.gmra.mxu1 %vm1091_vm6, %v1170_v16  ;;  %v1524_v16 = vld [vmem:[#allocation16 + $0x10] sm:$0xff] }
 0x28b   :  { %v1022_v53 = vadd.f32 %v1015_v29, %v979_v41  ;;  %v1525_v29 = vld [vmem:[#allocation16 + $0x18] sm:$0xff]  ;;  %v1555_v41 = vld [vmem:[#allocation16 + $0x30] sm:$0xff] }
 0x28d   :  { %v1029_v57 = vadd.f32 %v1964_v55, %v1022_v53 }
 0x28e   :  { %v937_v43 = vpop.f32.mrf.mxu1 }
 0x28f   :  { %v976_v44 = vadd.f32 %v975_v35, %v937_v43  ;;  %v1034_v7 = vmax.f32 %v1029_v57, 0.0  ;;  %v1523_v35 = vld [vmem:[#allocation16 + $0x8] sm:$0xff]  ;;  %v1522_v43 = vld [vmem:[#allocation16] sm:$0xff] }
 0x290   :  { %v1965_v57 = vld [vmem:[%s3015_s19] ss:$0 sm:$0xff] }
 0x291   :  { %v980_v54 = vadd.f32 %v976_v44, %v818_v38  ;;  %v1554_v38 = vld [vmem:[#allocation16 + $0x28] sm:$0xff]  ;;  %v1553_v44 = vld [vmem:[#allocation16 + $0x20] sm:$0xff] }
 0x293   :  { %v1023_v56 = vadd.f32 %v1018_v12, %v980_v54 }
 0x295   :  { %v1030_v5 = vadd.f32 %v1964_v55, %v1023_v56 }
 0x296   :  { %v1080_v58 = vpop.f32.mrf.mxu1 }
 0x297   :  { %v2871_v8 = vmax.f32 %v1030_v5, 0.0  ;;  %1889 = vmatmul.msk.f32.vlgmr.msra.gmra.mxu2 %vm1091_vm6, %v1080_v58 }
 0x299   :  { %1222 = vmatpush.msrb.mxu2 %v2871_v8  ;;  %1249 = vmatpush.msra.mxu3 %v2871_v8 }
 0x29b   :  { %1223 = vmatpush.msrb.mxu2 %v1034_v7  ;;  %1250 = vmatpush.msra.mxu3 %v1034_v7 }
 0x29d   :  { %1224 = vmatpush.msrb.mxu2 %v1033_v60  ;;  %1251 = vmatpush.msra.mxu3 %v1033_v60 }
 0x29e   :  { %v1083_v61 = vpop.f32.mrf.mxu1  ;;  %1903 = vmatmul.msk.f32.vlgmr.msra.gmra.mxu3 %vm485_vm3, %v2614_v21  ;;  %v1633_v21 = vld [vmem:[#allocation17 + $0x18] sm:$0xff] }
 0x29f   :  { %1346 = vmatpush.msra.mxu2 %v1327_v3  ;;  %1379 = vmatpush.msrb.mxu3 %v2787_v14 }
 0x2a0   :  { %1890 = vmatmul.msk.f32.gmra.mxu2 %vm1091_vm6, %v1083_v61 }
 0x2a1   :  { %1347 = vmatpush.msra.mxu2 %v1326_v6  ;;  %1380 = vmatpush.msrb.mxu3 %v2789_v46 }
 0x2a3   :  { %1509 = vmatpush.msra.mxu3 %v2871_v8  ;;  %1348 = vmatpush.msra.mxu2 %v1325_v62 }
 0x2a5   :  { %1510 = vmatpush.msra.mxu3 %v1034_v7  ;;  %1349 = vmatpush.msra.mxu2 %v1324_v63 }
 0x2a6   :  { %1904 = vmatmul.msk.f32.gmra.mxu3 %vm485_vm3, %v2624_v24  ;;  %v1630_v24 = vld [vmem:[#allocation17] sm:$0xff] }
 0x2a7   :  { %1511 = vmatpush.msra.mxu3 %v1033_v60 }
 0x2a8   :  { %1901 = vmatmul.msk.f32.vlgmr.msrb.gmra.mxu2 %vm485_vm3, %v2621_v23  ;;  %v1235_v23 = vld [vmem:[%s3011_s15 + $0x18] sm:$0xff] }
 0x2a9   :  { %1311 = vmatpush.msra.mxu1 %v1235_v23  ;;  %1482 = vmatpush.msrb.mxu2 %v1394_v15 }
 0x2ae   :  { %1915 = vmatmul.msk.f32.vlgmr.msrb.gmra.mxu3 %vm281_vm0, %v2651_v32  ;;  %v1233_v32 = vld [vmem:[%s3011_s15 + $0x8] sm:$0xff] }
 0x2af   :  { %1655 = vmatpush.msrb.mxu3 %v1633_v21 }
 0x2b0   :  { %1902 = vmatmul.msk.f32.gmra.mxu2 %vm485_vm3, %v2632_v26  ;;  %v1234_v26 = vld [vmem:[%s3011_s15 + $0x10] sm:$0xff] }
 0x2b1   :  { %1656 = vmatpush.msrb.mxu3 %v1632_v0  ;;  %1312 = vmatpush.msra.mxu1 %v1234_v26  ;;  %v1723_v26 = vld [vmem:[#allocation20 + $0x18] sm:$0xff] }
 0x2b3   :  { %1657 = vmatpush.msrb.mxu3 %v1631_v1  ;;  %1313 = vmatpush.msra.mxu1 %v1233_v32 }
 0x2b5   :  { %1658 = vmatpush.msrb.mxu3 %v1630_v24 }
 0x2b6   :  { %1916 = vmatmul.msk.f32.gmra.mxu3 %vm281_vm0, %v2665_v34  ;;  %v1232_v34 = vld [vmem:[%s3011_s15] sm:$0xff] }
 0x2b7   :  { %1314 = vmatpush.msra.mxu1 %v1232_v34  ;;  %v1722_v34 = vld [vmem:[#allocation20 + $0x10] sm:$0xff] }
 0x2b8   :  { %1913 = vmatmul.msk.f32.vlgmr.msra.gmra.mxu2 %vm1091_vm6, %v2789_v46 }
 0x2b9   :  { %1447 = vmatpush.msrb.mxu1 %v1425_v18 }
 0x2be   :  { %1917 = vmatmul.msk.f32.gmra.mxu3 %vm281_vm0, %v2676_v36 }
 0x2c0   :  { %1914 = vmatmul.msk.f32.gmra.mxu2 %vm1091_vm6, %v2787_v14 }
 0x2c6   :  { %1927 = vmatmul.msk.f32.vlgmr.msra.gmra.mxu3 %vm485_vm3, %v2684_v39 }
 0x2ce   :  { %1928 = vmatmul.msk.f32.gmra.mxu3 %vm485_vm3, %v2692_v42 }
 0x2d6   :  { %1929 = vmatmul.msk.f32.gmra.mxu3 %vm485_vm3, %v2700_v45 }
 0x2de   :  { %1939 = vmatmul.msk.f32.vlgmr.msrb.gmra.mxu3 %vm1091_vm6, %v1033_v60 }
 0x2e6   :  { %1940 = vmatmul.msk.f32.gmra.mxu3 %vm1091_vm6, %v1034_v7 }
 0x2ee   :  { %1941 = vmatmul.msk.f32.gmra.mxu3 %vm1091_vm6, %v2871_v8 }
 0x2f5   :  { %v1144_v36 = vpop.f32.mrf.mxu3 }
 0x2fd   :  { %v1147_v39 = vpop.f32.mrf.mxu3 }
 0x2ff   :  { %v1201_v28 = vpop.f32.mrf.mxu1 }
 0x307   :  { %v1204_v37 = vpop.f32.mrf.mxu1 }
 0x31a   :  { %v1115_v42 = vpop.f32.mrf.mxu2 }
 0x31b   :  { %v2932_v45 = vadd.f32 %v1144_v36, %v1115_v42  ;;  %v1966_v36 = vld [vmem:[%s3019_s23] ss:$0 sm:$0xff]  ;;  %v1721_v42 = vld [vmem:[#allocation20 + $0x8] sm:$0xff] }
 0x31d   :  { %v1207_v54 = vadd.f32 %v1201_v28, %v2932_v45  ;;  %v1720_v45 = vld [vmem:[#allocation20] sm:$0xff] }
 0x321   :  { %v1253_v14 = vpop.f32.mrf.mxu3 }
 0x322   :  { %1909 = vmatmul.msk.f32.vlgmr.msrb.gmra.mxu0 %vm1091_vm6, %v1253_v14 }
 0x323   :  { %v1118_v46 = vpop.f32.mrf.mxu2  ;;  %1539 = vmatpush.msrb.mxu0 %v2871_v8 }
 0x324   :  { %v2935_v4 = vadd.f32 %v1147_v39, %v1118_v46 }
 0x325   :  { %1540 = vmatpush.msrb.mxu0 %v1034_v7 }
 0x326   :  { %v1208_v7 = vadd.f32 %v1204_v37, %v2935_v4 }
 0x327   :  { %1541 = vmatpush.msrb.mxu0 %v1033_v60 }
 0x329   :  { %v1256_v9 = vpop.f32.mrf.mxu3 }
 0x32a   :  { %1910 = vmatmul.msk.f32.gmra.mxu0 %vm1091_vm6, %v1256_v9 }
 0x32b   :  { %v1226_v10 = vpop.f32.mrf.mxu2 }
 0x32c   :  { %1911 = vmatmul.msk.f32.vlgmr.msra.gmra.mxu1 %vm1091_vm6, %v1226_v10 }
 0x331   :  { %v1382_v13 = vpop.f32.mrf.mxu3 }
 0x332   :  { %1918 = vmatmul.msk.f32.vlgmr.msra.gmra.mxu0 %vm281_vm0, %v2707_v47  ;;  %v1393_v47 = vld [vmem:[#allocation14 + $0x10] sm:$0xff] }
 0x333   :  { %v1229_v11 = vpop.f32.mrf.mxu2  ;;  %1483 = vmatpush.msrb.mxu2 %v1393_v47 }
 0x334   :  { %1912 = vmatmul.msk.f32.gmra.mxu1 %vm1091_vm6, %v1229_v11 }
 0x335   :  { %1484 = vmatpush.msrb.mxu2 %v1392_v17 }
 0x337   :  { %1485 = vmatpush.msrb.mxu2 %v1391_v19 }
 0x338   :  { %1924 = vmatmul.msk.f32.vlgmr.msrb.gmra.mxu2 %vm1091_vm6, %v1382_v13 }
 0x339   :  { %1613 = vmatpush.msra.mxu2 %v1525_v29 }
 0x33a   :  { %1919 = vmatmul.msk.f32.gmra.mxu0 %vm281_vm0, %v2715_v48  ;;  %v1385_v48 = vpop.f32.mrf.mxu3 }
 0x33b   :  { %1614 = vmatpush.msra.mxu2 %v1524_v16  ;;  %v1351_v55 = vpop.f32.mrf.mxu2 }
 0x33d   :  { %1615 = vmatpush.msra.mxu2 %v1523_v35 }
 0x33f   :  { %1616 = vmatpush.msra.mxu2 %v1522_v43 }
 0x340   :  { %1925 = vmatmul.msk.f32.gmra.mxu2 %vm1091_vm6, %v1385_v48 }
 0x342   :  { %1920 = vmatmul.msk.f32.gmra.mxu0 %vm281_vm0, %v2722_v49  ;;  %v1682_v49 = vld [vmem:[#allocation19 + $0x18] sm:$0xff]  ;;  %v1388_v27 = vpop.f32.mrf.mxu3 }
 0x343   :  { %1705 = vmatpush.msra.mxu0 %v1682_v49  ;;  %v1354_v61 = vpop.f32.mrf.mxu2 }
 0x348   :  { %1926 = vmatmul.msk.f32.gmra.mxu2 %vm1091_vm6, %v1388_v27 }
 0x34a   :  { %1930 = vmatmul.msk.f32.vlgmr.msrb.gmra.mxu0 %vm485_vm3, %v2726_v50  ;;  %v1424_v50 = vld [vmem:[#allocation14 + $0x30] sm:$0xff]  ;;  %v1513_v31 = vpop.f32.mrf.mxu3 }
 0x34b   :  { %1448 = vmatpush.msrb.mxu1 %v1424_v50 }
 0x350   :  { %1936 = vmatmul.msk.f32.vlgmr.msra.gmra.mxu2 %vm1091_vm6, %v1513_v31 }
 0x352   :  { %1931 = vmatmul.msk.f32.gmra.mxu0 %vm485_vm3, %v2730_v51  ;;  %v1681_v51 = vld [vmem:[#allocation19 + $0x10] sm:$0xff]  ;;  %v1516_v40 = vpop.f32.mrf.mxu3 }
 0x353   :  { %1706 = vmatpush.msra.mxu0 %v1681_v51 }
 0x355   :  { %1707 = vmatpush.msra.mxu0 %v1680_v20 }
 0x357   :  { %1708 = vmatpush.msra.mxu0 %v1679_v25 }
 0x358   :  { %1937 = vmatmul.msk.f32.gmra.mxu2 %vm1091_vm6, %v1516_v40 }
 0x35a   :  { %1932 = vmatmul.msk.f32.gmra.mxu0 %vm485_vm3, %v2734_v52  ;;  %v1423_v52 = vld [vmem:[#allocation14 + $0x28] sm:$0xff]  ;;  %v1519_v3 = vpop.f32.mrf.mxu3 }
 0x35b   :  { %1449 = vmatpush.msrb.mxu1 %v1423_v52  ;;  %v1967_v52 = vld [vmem:[%s3017_s21] ss:$0 sm:$0xff]  ;;  %s2337_s21 = smov [#allocation22]  }
 0x35c   :  { %s1773_s24 = sshll.u32 %s2337_s21, 4  ;;  %s1774_s24 = int_to_ptr.vmem [resolvable:$true] %s1773_s24 }
 0x35d   :  { %1450 = vmatpush.msrb.mxu1 %v1422_v22 }
 0x35f   :  { %1578 = vmatpush.msra.mxu1 %v1556_v30 }
 0x360   :  { %1938 = vmatmul.msk.f32.gmra.mxu2 %vm1091_vm6, %v1519_v3 }
 0x361   :  { %1579 = vmatpush.msra.mxu1 %v1555_v41 }
 0x362   :  { %v1660_v18 = vpop.f32.mrf.mxu3 }
 0x363   :  { %1580 = vmatpush.msra.mxu1 %v1554_v38 }
 0x365   :  { %1581 = vmatpush.msra.mxu1 %v1553_v44 }
 0x36a   :  { %v1663_v30 = vpop.f32.mrf.mxu3 }
 0x372   :  { %v1666_v40 = vpop.f32.mrf.mxu3 }
 0x39f   :  { %v1287_v33 = vpop.f32.mrf.mxu0 }
 0x3a7   :  { %v1290_v12 = vpop.f32.mrf.mxu0 }
 0x3a9   :  { %v1316_v53 = vpop.f32.mrf.mxu1 }
 0x3aa   :  { %v1317_v2 = vadd.f32 %v1316_v53, %v1287_v33  ;;  %v1968_v53 = vld [vmem:[%s3021_s25] ss:$0 sm:$0xff] }
 0x3ac   :  { %v1322_v56 = vadd.f32 %v1317_v2, %v1207_v54 }
 0x3ae   :  { %v1357_v5 = vadd.f32 %v1351_v55, %v1322_v56 }
 0x3af   :  { %v1412_v59 = vpop.f32.mrf.mxu0 }
 0x3b0   :  { %v1363_v58 = vadd.f32 %v1965_v57, %v1357_v5  ;;  %1921 = vmatmul.msk.f32.vlgmr.msrb.gmra.mxu1 %vm1091_vm6, %v1412_v59 }
 0x3b1   :  { %v1319_v8 = vpop.f32.mrf.mxu1  ;;  %1749 = vmatpush.msrb.mxu1 %v1723_v26 }
 0x3b2   :  { %v1320_v60 = vadd.f32 %v1319_v8, %v1290_v12  ;;  %1942 = vmatmul.msk.f32.vlgmr.msra.gmra.mxu0 %vm1091_vm6, %v1363_v58 }
 0x3b3   :  { %1750 = vmatpush.msrb.mxu1 %v1722_v34 }
 0x3b4   :  { %v1323_v6 = vadd.f32 %v1320_v60, %v1208_v7 }
 0x3b5   :  { %1751 = vmatpush.msrb.mxu1 %v1721_v42 }
 0x3b6   :  { %v1358_v62 = vadd.f32 %v1354_v61, %v1323_v6 }
 0x3b7   :  { %v1415_v21 = vpop.f32.mrf.mxu0  ;;  %1752 = vmatpush.msrb.mxu1 %v1720_v45 }
 0x3b8   :  { %v1364_v63 = vadd.f32 %v1965_v57, %v1358_v62  ;;  %1922 = vmatmul.msk.f32.gmra.mxu1 %vm1091_vm6, %v1415_v21 }
 0x3ba   :  { %1943 = vmatmul.msk.f32.gmra.mxu0 %vm1091_vm6, %v1364_v63 }
 0x3bb   :  { %v1487_v32 = vpop.f32.mrf.mxu2 }
 0x3bf   :  { %v1418_v0 = vpop.f32.mrf.mxu0 }
 0x3c0   :  { %1923 = vmatmul.msk.f32.gmra.mxu1 %vm1091_vm6, %v1418_v0 }
 0x3c3   :  { %v1490_v39 = vpop.f32.mrf.mxu2 }
 0x3c7   :  { %v1543_v1 = vpop.f32.mrf.mxu0 }
 0x3c8   :  { %1933 = vmatmul.msk.f32.vlgmr.msra.gmra.mxu1 %vm1091_vm6, %v1543_v1 }
 0x3cb   :  { %v1493_v10 = vpop.f32.mrf.mxu2 }
 0x3cf   :  { %v1546_v24 = vpop.f32.mrf.mxu0 }
 0x3d0   :  { %1934 = vmatmul.msk.f32.gmra.mxu1 %vm1091_vm6, %v1546_v24 }
 0x3d3   :  { %v1618_v48 = vpop.f32.mrf.mxu2 }
 0x3d7   :  { %v1549_v23 = vpop.f32.mrf.mxu0 }
 0x3d8   :  { %1935 = vmatmul.msk.f32.gmra.mxu1 %vm1091_vm6, %v1549_v23 }
 0x3db   :  { %v1621_v20 = vpop.f32.mrf.mxu2 }
 0x3e3   :  { %v1624_v33 = vpop.f32.mrf.mxu2 }
 0x42d   :  { %v1452_v14 = vpop.f32.mrf.mxu1 }
 0x42e   :  { %v1488_v49 = vadd.f32 %v1487_v32, %v1452_v14 }
 0x42f   :  { %v1710_v46 = vpop.f32.mrf.mxu0 }
 0x430   :  { %v1711_v4 = vadd.f32 %v1966_v36, %v1710_v46 }
 0x432   :  { %v1716_v9 = vmax.f32 %v1711_v4, 0.0 }
 0x434   :  { %1718 = vst [vmem:[#allocation22] sm:$0xff] %v1716_v9 }
 0x435   :  { %v1455_v11 = vpop.f32.mrf.mxu1 }
 0x436   :  { %v1491_v28 = vadd.f32 %v1490_v39, %v1455_v11 }
 0x437   :  { %v1713_v13 = vpop.f32.mrf.mxu0 }
 0x438   :  { %v1714_v15 = vadd.f32 %v1966_v36, %v1713_v13 }
 0x43a   :  { %v1717_v47 = vmax.f32 %v1714_v15, 0.0 }
 0x43c   :  { %1719 = vst [vmem:[#allocation22 + $0x8] sm:$0xff] %v1717_v47 }
 0x43d   :  { %v1458_v17 = vpop.f32.mrf.mxu1  ;;  %1781 = dma.vmem_to_hbm [thread:$0]  %s1774_s24, 256, %s1776_s8, [#allocation4], %s2324_s1, %s2324_s1, %s2325_s6  }
 0x43e   :  { %v1494_v41 = vadd.f32 %v1493_v10, %v1458_v17 }
 0x445   :  { %v1583_v19 = vpop.f32.mrf.mxu1 }
 0x446   :  { %v1619_v50 = vadd.f32 %v1618_v48, %v1583_v19 }
 0x448   :  { %v1627_v51 = vadd.f32 %v1619_v50, %v1488_v49 }
 0x44a   :  { %v1669_v22 = vadd.f32 %v1660_v18, %v1627_v51 }
 0x44c   :  { %v1676_v25 = vadd.f32 %v1967_v52, %v1669_v22 }
 0x44d   :  { %v1586_v27 = vpop.f32.mrf.mxu1 }
 0x44e   :  { %v1622_v29 = vadd.f32 %v1621_v20, %v1586_v27  ;;  %1944 = vmatmul.msk.f32.vlgmr.msrb.gmra.mxu1 %vm1091_vm6, %v1676_v25 }
 0x450   :  { %v1628_v16 = vadd.f32 %v1622_v29, %v1491_v28 }
 0x452   :  { %v1670_v31 = vadd.f32 %v1663_v30, %v1628_v16 }
 0x454   :  { %v1677_v35 = vadd.f32 %v1967_v52, %v1670_v31 }
 0x455   :  { %v1589_v37 = vpop.f32.mrf.mxu1 }
 0x456   :  { %v1625_v43 = vadd.f32 %v1624_v33, %v1589_v37  ;;  %1945 = vmatmul.msk.f32.gmra.mxu1 %vm1091_vm6, %v1677_v35 }
 0x458   :  { %v1629_v38 = vadd.f32 %v1625_v43, %v1494_v41 }
 0x45a   :  { %v1671_v44 = vadd.f32 %v1666_v40, %v1629_v38 }
 0x45c   :  { %v1678_v12 = vadd.f32 %v1967_v52, %v1671_v44 }
 0x45e   :  { %1946 = vmatmul.msk.f32.gmra.mxu1 %vm1091_vm6, %v1678_v12 }
 0x4cb   :  { %v1754_v54 = vpop.f32.mrf.mxu1 }
 0x4cc   :  { %v1755_v2 = vadd.f32 %v1968_v53, %v1754_v54 }
 0x4ce   :  { %v1763_v55 = vmax.f32 %v1755_v2, 0.0 }
 0x4d0   :  { %1766 = vst [vmem:[#allocation23] sm:$0xff] %v1763_v55 }
 0x4d3   :  { %v1757_v56 = vpop.f32.mrf.mxu1 }
 0x4d4   :  { %v1758_v57 = vadd.f32 %v1968_v53, %v1757_v56 }
 0x4d6   :  { %v1764_v5 = vmax.f32 %v1758_v57, 0.0 }
 0x4d8   :  { %1767 = vst [vmem:[#allocation23 + $0x8] sm:$0xff] %v1764_v5 }
 0x4db   :  { %v1760_v58 = vpop.f32.mrf.mxu1 }
 0x4dc   :  { %v1761_v59 = vadd.f32 %v1968_v53, %v1760_v58 }
 0x4de   :  { %v1765_v8 = vmax.f32 %v1761_v59, 0.0 }
 0x4e0   :  { %1768 = vst [vmem:[#allocation23 + $0x10] sm:$0xff] %v1765_v8 }
 0x4e1   :  { %1794 = dma.vmem_to_hbm [thread:$0]  %s1787_s13, 384, %s1789_s11, [#allocation24], %s2324_s1, %s2324_s1, %s2325_s6  }
 0x4e2   :  { %2319 = dma.done.wait [#allocation4], 256  }
 0x4e3   :  { %2320 = vsyncadd [#allocation4], 4294967040 }
 0x4e4   :  { %2321 = dma.done.wait [#allocation24], 384  }
 0x4e5   :  { %2322 = vsyncadd [#allocation24], 4294966912 }
 0x4e6   :  { %1803 = vsyncpa [#allocation3], 1 }
 0x4e7   :  { %1804 = vsyncpa [#allocation6], 1 }
 0x4e8   :  { %1805 = vsyncpa [#allocation9], 1 }
 0x4e9   :  { %1806 = vsyncpa [#allocation12], 1 }
 0x4ea   :  { %1807 = vsyncpa [#allocation15], 1 }
 0x4eb   :  { %1808 = vsyncpa [#allocation18], 1 }
 0x4ec   :  { %1809 = vsyncpa [#allocation21], 1 }
 0x4ed   :  { %1810 = vsyncpa [#allocation4], 1 }
 0x4ee   :  { %1811 = vsyncpa [#allocation24], 1 }

</bundles_post_ra>
